<compile_context>
chip_gen: v5e
topology: v5e:2x2
jax: 0.10.0
libtpu: 0.0.40
codegen_flags: <defaults>
</compile_context>

<pallas_src>
import functools

import jax
import jax.numpy as jnp
from jax.experimental import pallas as pl
from jax.experimental.pallas import tpu as pltpu

PACK = 8  # logical rows per physical row: 8*16 = 128 output lanes (full vreg)


def _round_up(n: int, m: int) -> int:
    return ((n + m - 1) // m) * m


def time_residual_mlp_kernel(x_ref, w0_ref, b0_ref, w1_ref, b1_ref,
                             w2_ref, b2_ref, o_ref):
    x = x_ref[...].astype(jnp.float32)

    # Block 0 (standard: in != hidden0): relu(x @ W0 + b0)
    h0 = jnp.dot(x, w0_ref[...], preferred_element_type=jnp.float32) + b0_ref[...]
    h0 = jnp.maximum(h0, 0.0)

    # Block 1 (residual: hidden0 == hidden1): h0 + relu(h0 @ W1 + b1)
    z1 = jnp.dot(h0, w1_ref[...], preferred_element_type=jnp.float32) + b1_ref[...]
    h1 = h0 + jnp.maximum(z1, 0.0)   # RESIDUAL_NORMALIZATION_CONSTANT = 1

    # Final linear (hidden1 -> out): bias, no activation
    out = jnp.dot(h1, w2_ref[...], preferred_element_type=jnp.float32) + b2_ref[...]
    o_ref[...] = out.astype(o_ref.dtype)


@functools.partial(jax.jit, static_argnames=("tile_b", "io_dtype"))
def time_residual_mlp(x, params, *, tile_b: int = 1024, io_dtype=jnp.float32):
    """tile_b is in *packed* rows (1 packed row = PACK logical rows)."""
    (w0, b0, w1, b1, w2, b2) = params
    B, in_dim = x.shape
    out_dim = w2.shape[1]

    # --- lane-dense packing of the batch -------------------------------------
    # Pad the batch only to a multiple of PACK*8 (= 64 rows, <= 8 KB waste),
    # so packed rows are a multiple of 8 sublanes; no pad-to-tile round trip.
    B_pad = _round_up(B, PACK * 8)
    if B_pad != B:
        x = jnp.pad(x, ((0, B_pad - B), (0, 0)))
    rows = B_pad // PACK
    xp = x.reshape(rows, PACK * in_dim).astype(io_dtype)   # contiguous reshape: free

    # Block-diagonal weights (PACK copies on the diagonal) + tiled biases.
    # Tiny (<2 MB f32 total) -> fetched once, VMEM-resident across grid steps.
    eye = jnp.eye(PACK, dtype=w0.dtype)
    w0p = jnp.kron(eye, w0)                 # (PACK*32, PACK*64)
    w1p = jnp.kron(eye, w1)                 # (PACK*64, PACK*64)
    w2p = jnp.kron(eye, w2)                 # (PACK*64, PACK*16)
    b0p = jnp.tile(b0, (1, PACK))
    b1p = jnp.tile(b1, (1, PACK))
    b2p = jnp.tile(b2, (1, PACK))

    # --- tile selection -------------------------------------------------------
    TB = min(tile_b, rows)
    grid_n = pl.cdiv(rows, TB)
    # If the batch needs several tiles but fewer than 4, rebalance so the grid
    # is deep enough for the v7x dual-TC split and the prefetch pipeline.
    if 1 < grid_n < 4:
        TB = max(8, _round_up(pl.cdiv(rows, 4), 8))
        grid_n = pl.cdiv(rows, TB)

    def const2d(arr):
        return pl.BlockSpec(arr.shape, lambda i: (0, 0))

    out = pl.pallas_call(
        time_residual_mlp_kernel,
        out_shape=jax.ShapeDtypeStruct((rows, PACK * out_dim), io_dtype),
        grid=(grid_n,),
        in_specs=[
            pl.BlockSpec((TB, PACK * in_dim), lambda i: (i, 0)),   # streamed x
            const2d(w0p), const2d(b0p),
            const2d(w1p), const2d(b1p),
            const2d(w2p), const2d(b2p),
        ],
        out_specs=pl.BlockSpec((TB, PACK * out_dim), lambda i: (i, 0)),
        compiler_params=pltpu.CompilerParams(
            dimension_semantics=("parallel",),      # batch split across TCs
            vmem_limit_bytes=32 * 1024 * 1024,      # lifts v5e 16 MiB default; fits v7x 64 MiB
        ),
    )(xp, w0p, b0p, w1p, b1p, w2p, b2p)

    out = out.reshape(B_pad, out_dim)[:B]           # bitcast reshape + (maybe) slice
    return out.astype(jnp.float32) if io_dtype != jnp.float32 else out


def init_params(key, in_channels, hidden_channels, out_channels):
    """Deterministic PyTorch-style uniform(-1/sqrt(fan_in), 1/sqrt(fan_in)) init."""
    dims = [in_channels] + list(hidden_channels) + [out_channels]
    params = []
    for i in range(len(dims) - 1):
        fan_in, fan_out = dims[i], dims[i + 1]
        key, kw, kb = jax.random.split(key, 3)
        bound = 1.0 / jnp.sqrt(fan_in)
        w = jax.random.uniform(kw, (fan_in, fan_out), jnp.float32, -bound, bound)
        b = jax.random.uniform(kb, (1, fan_out), jnp.float32, -bound, bound)
        params += [w, b]
    return tuple(params)


def reference_forward(x, params):
    (w0, b0, w1, b1, w2, b2) = params
    h0 = jnp.maximum(x @ w0 + b0, 0.0)          # standard block (dims differ)
    h1 = h0 + jnp.maximum(h0 @ w1 + b1, 0.0)    # residual block (dims equal)
    return h1 @ w2 + b2                          # final linear


if __name__ == "__main__":
    B, IN_C, HIDDEN, OUT_C = 8, 32, [64, 64], 16

    key = jax.random.PRNGKey(0)
    key, kx = jax.random.split(key)
    # X.flatten(1) in the torch forward -> feed already-flat (B, in_channels)
    x = jax.random.normal(kx, (B, IN_C), jnp.float32)

    params = init_params(key, IN_C, HIDDEN, OUT_C)

    out = time_residual_mlp(x, params)
    out = jax.block_until_ready(out)

    ref = reference_forward(x, params)
    assert out.shape == (B, OUT_C)
    assert jnp.allclose(out, ref, atol=1e-5, rtol=1e-5)

    # TODO(synk): time_embedding / batch_norm / layer_norm / dropout branches of
    # TimeResidualMLP are disabled in this config and not implemented here.

    print("KERNEL_OK")
</pallas_src>

<mosaic_0001>
module attributes {stable_mosaic.version = 11 : i64} {
  func.func @time_residual_mlp_kernel(%arg0: i32, %arg1: memref<8x256xf32, #tpu.memory_space<vmem>>, %arg2: memref<256x512xf32, #tpu.memory_space<vmem>>, %arg3: memref<1x512xf32, #tpu.memory_space<vmem>>, %arg4: memref<512x512xf32, #tpu.memory_space<vmem>>, %arg5: memref<1x512xf32, #tpu.memory_space<vmem>>, %arg6: memref<512x128xf32, #tpu.memory_space<vmem>>, %arg7: memref<1x128xf32, #tpu.memory_space<vmem>>, %arg8: memref<8x128xf32, #tpu.memory_space<vmem>>) attributes {dimension_semantics = [#tpu.dimension_semantics<parallel>], iteration_bounds = array<i64: 1>, scalar_prefetch = 0 : i64, scratch_operands = 0 : i64, tpu.core_type = #tpu.core_type<tc>, window_params = [{transform_indices = @transform_0, window_bounds = array<i64: 8, 256>}, {pipeline_mode = #tpu.pipeline_mode<synchronous>, transform_indices = @transform_1, window_bounds = array<i64: 256, 512>}, {pipeline_mode = #tpu.pipeline_mode<synchronous>, transform_indices = @transform_2, window_bounds = array<i64: 1, 512>}, {pipeline_mode = #tpu.pipeline_mode<synchronous>, transform_indices = @transform_3, window_bounds = array<i64: 512, 512>}, {pipeline_mode = #tpu.pipeline_mode<synchronous>, transform_indices = @transform_4, window_bounds = array<i64: 1, 512>}, {pipeline_mode = #tpu.pipeline_mode<synchronous>, transform_indices = @transform_5, window_bounds = array<i64: 512, 128>}, {pipeline_mode = #tpu.pipeline_mode<synchronous>, transform_indices = @transform_6, window_bounds = array<i64: 1, 128>}, {transform_indices = @transform_7, window_bounds = array<i64: 8, 128>}]} {
    %c0 = arith.constant 0 : index
    %c0_0 = arith.constant 0 : index
    %0 = vector.load %arg1[%c0, %c0_0] : memref<8x256xf32, #tpu.memory_space<vmem>>, vector<8x256xf32>
    %c0_1 = arith.constant 0 : index
    %c0_2 = arith.constant 0 : index
    %1 = vector.load %arg2[%c0_1, %c0_2] : memref<256x512xf32, #tpu.memory_space<vmem>>, vector<256x512xf32>
    %cst = arith.constant dense<0.000000e+00> : vector<8x512xf32>
    %2 = tpu.matmul %0, %1, %cst {dimension_numbers = #tpu.dot_dimension_numbers<[1], [0], [0], [1], [0, 0, 1, 1], [], []>} : vector<8x256xf32>, vector<256x512xf32>, vector<8x512xf32> -> vector<8x512xf32>
    %c0_3 = arith.constant 0 : index
    %c0_4 = arith.constant 0 : index
    %3 = vector.load %arg3[%c0_3, %c0_4] : memref<1x512xf32, #tpu.memory_space<vmem>>, vector<1x512xf32>
    %4 = vector.broadcast %3 : vector<1x512xf32> to vector<8x512xf32>
    %5 = arith.addf %2, %4 : vector<8x512xf32>
    %cst_5 = arith.constant 0.000000e+00 : f32
    %6 = vector.broadcast %cst_5 : f32 to vector<8x512xf32>
    %7 = arith.maximumf %5, %6 : vector<8x512xf32>
    %c0_6 = arith.constant 0 : index
    %c0_7 = arith.constant 0 : index
    %8 = vector.load %arg4[%c0_6, %c0_7] : memref<512x512xf32, #tpu.memory_space<vmem>>, vector<512x512xf32>
    %cst_8 = arith.constant dense<0.000000e+00> : vector<8x512xf32>
    %9 = tpu.matmul %7, %8, %cst_8 {dimension_numbers = #tpu.dot_dimension_numbers<[1], [0], [0], [1], [0, 0, 1, 1], [], []>} : vector<8x512xf32>, vector<512x512xf32>, vector<8x512xf32> -> vector<8x512xf32>
    %c0_9 = arith.constant 0 : index
    %c0_10 = arith.constant 0 : index
    %10 = vector.load %arg5[%c0_9, %c0_10] : memref<1x512xf32, #tpu.memory_space<vmem>>, vector<1x512xf32>
    %11 = vector.broadcast %10 : vector<1x512xf32> to vector<8x512xf32>
    %12 = arith.addf %9, %11 : vector<8x512xf32>
    %cst_11 = arith.constant 0.000000e+00 : f32
    %13 = vector.broadcast %cst_11 : f32 to vector<8x512xf32>
    %14 = arith.maximumf %12, %13 : vector<8x512xf32>
    %15 = arith.addf %7, %14 : vector<8x512xf32>
    %c0_12 = arith.constant 0 : index
    %c0_13 = arith.constant 0 : index
    %16 = vector.load %arg6[%c0_12, %c0_13] : memref<512x128xf32, #tpu.memory_space<vmem>>, vector<512x128xf32>
    %cst_14 = arith.constant dense<0.000000e+00> : vector<8x128xf32>
    %17 = tpu.matmul %15, %16, %cst_14 {dimension_numbers = #tpu.dot_dimension_numbers<[1], [0], [0], [1], [0, 0, 1, 1], [], []>} : vector<8x512xf32>, vector<512x128xf32>, vector<8x128xf32> -> vector<8x128xf32>
    %c0_15 = arith.constant 0 : index
    %c0_16 = arith.constant 0 : index
    %18 = vector.load %arg7[%c0_15, %c0_16] : memref<1x128xf32, #tpu.memory_space<vmem>>, vector<1x128xf32>
    %19 = vector.broadcast %18 : vector<1x128xf32> to vector<8x128xf32>
    %20 = arith.addf %17, %19 : vector<8x128xf32>
    %c0_17 = arith.constant 0 : index
    %c0_18 = arith.constant 0 : index
    %21 = vector.load %arg8[%c0_17, %c0_18] : memref<8x128xf32, #tpu.memory_space<vmem>>, vector<8x128xf32>
    tpu.vector_store %arg8[%c0_17, %c0_18], %20 {strides = array<i32>} : memref<8x128xf32, #tpu.memory_space<vmem>>, vector<8x128xf32>,
    return
  }
  func.func @transform_0(%arg0: i32) -> (i32, i32) {
    %c0_i32 = arith.constant 0 : i32
    %c0_i32_0 = arith.constant 0 : i32
    return %arg0, %c0_i32 : i32, i32
  }
  func.func @transform_1(%arg0: i32) -> (i32, i32) {
    %c0_i32 = arith.constant 0 : i32
    %c0_i32_0 = arith.constant 0 : i32
    %c0_i32_1 = arith.constant 0 : i32
    return %c0_i32, %c0_i32_0 : i32, i32
  }
  func.func @transform_2(%arg0: i32) -> (i32, i32) {
    %c0_i32 = arith.constant 0 : i32
    %c0_i32_0 = arith.constant 0 : i32
    %c0_i32_1 = arith.constant 0 : i32
    return %c0_i32, %c0_i32_0 : i32, i32
  }
  func.func @transform_3(%arg0: i32) -> (i32, i32) {
    %c0_i32 = arith.constant 0 : i32
    %c0_i32_0 = arith.constant 0 : i32
    %c0_i32_1 = arith.constant 0 : i32
    return %c0_i32, %c0_i32_0 : i32, i32
  }
  func.func @transform_4(%arg0: i32) -> (i32, i32) {
    %c0_i32 = arith.constant 0 : i32
    %c0_i32_0 = arith.constant 0 : i32
    %c0_i32_1 = arith.constant 0 : i32
    return %c0_i32, %c0_i32_0 : i32, i32
  }
  func.func @transform_5(%arg0: i32) -> (i32, i32) {
    %c0_i32 = arith.constant 0 : i32
    %c0_i32_0 = arith.constant 0 : i32
    %c0_i32_1 = arith.constant 0 : i32
    return %c0_i32, %c0_i32_0 : i32, i32
  }
  func.func @transform_6(%arg0: i32) -> (i32, i32) {
    %c0_i32 = arith.constant 0 : i32
    %c0_i32_0 = arith.constant 0 : i32
    %c0_i32_1 = arith.constant 0 : i32
    return %c0_i32, %c0_i32_0 : i32, i32
  }
  func.func @transform_7(%arg0: i32) -> (i32, i32) {
    %c0_i32 = arith.constant 0 : i32
    %c0_i32_0 = arith.constant 0 : i32
    return %arg0, %c0_i32 : i32, i32
  }
}

</mosaic_0001>

<bundles_post_ra>
// kernel: time_residual_mlp.1
= control target key start
LH: loop header
LB: loop body
LE: loop exit
PB: predicated region body
PF: predicated region fallthrough
CT: control target
= control target key end

     0   :  { %s2532_s1 = inlined_call_operand.vmem [shape: f32[256,512], index: 1, kind: input, shape index: {}]   ;;  %s2533_s0 = inlined_call_operand.vmem [shape: f32[8,256], index: 0, kind: input, shape index: {}]   ;;  %s2534_s3 = inlined_call_operand.vmem [shape: f32[512,512], index: 3, kind: input, shape index: {}]   ;;  %s2535_s2 = inlined_call_operand.vmem [shape: f32[1,512], index: 2, kind: input, shape index: {}]   ;;  %s2536_s5 = inlined_call_operand.vmem [shape: f32[512,128], index: 5, kind: input, shape index: {}]   ;;  %s2537_s6 = inlined_call_operand.vmem [shape: f32[1,128], index: 6, kind: input, shape index: {}]   ;;  %s2538_s4 = inlined_call_operand.vmem [shape: f32[1,512], index: 4, kind: input, shape index: {}]   ;;  %s2539_s7 = inlined_call_operand.vmem [shape: f32[8,128], index: 7, kind: output, shape index: {}]  }
   0x1   :  { %v88_v0 = vld [vmem:[%s2532_s1 + $0x1e0] sm:$0xff]  ;;  %v89_v1 = vld [vmem:[%s2532_s1 + $0x1e8] sm:$0xff]  ;;  %v90_v63 = vld [vmem:[%s2532_s1 + $0x1f0] sm:$0xff] }
   0x2   :  { %v84_v2 = vld [vmem:[%s2532_s1 + $0x1c0] sm:$0xff]  ;;  %166 = vmatpush.msra.mxu0 %v88_v0  ;;  %206 = vmatpush.msra.mxu2 %v89_v1  ;;  %v85_v4 = vld [vmem:[%s2532_s1 + $0x1c8] sm:$0xff]  ;;  %v91_v0 = vld [vmem:[%s2532_s1 + $0x1f8] sm:$0xff] }
   0x3   :  { %v152_v3 = vld [vmem:[%s2532_s1 + $0x3e0] sm:$0xff]  ;;  %v153_v5 = vld [vmem:[%s2532_s1 + $0x3e8] sm:$0xff] }
   0x4   :  { %186 = vmatpush.msra.mxu1 %v152_v3  ;;  %226 = vmatpush.msra.mxu3 %v153_v5  ;;  %v80_v6 = vld [vmem:[%s2532_s1 + $0x1a0] sm:$0xff]  ;;  %v81_v8 = vld [vmem:[%s2532_s1 + $0x1a8] sm:$0xff]  ;;  %v154_v5 = vld [vmem:[%s2532_s1 + $0x3f0] sm:$0xff] }
   0x5   :  { %v148_v7 = vld [vmem:[%s2532_s1 + $0x3c0] sm:$0xff]  ;;  %167 = vmatpush.msra.mxu0 %v84_v2  ;;  %207 = vmatpush.msra.mxu2 %v85_v4  ;;  %v149_v9 = vld [vmem:[%s2532_s1 + $0x3c8] sm:$0xff]  ;;  %v86_v4 = vld [vmem:[%s2532_s1 + $0x1d0] sm:$0xff] }
   0x6   :  { %v144_v10 = vld [vmem:[%s2532_s1 + $0x3a0] sm:$0xff]  ;;  %187 = vmatpush.msra.mxu1 %v148_v7  ;;  %227 = vmatpush.msra.mxu3 %v149_v9  ;;  %v77_v12 = vld [vmem:[%s2532_s1 + $0x188] sm:$0xff]  ;;  %v155_v7 = vld [vmem:[%s2532_s1 + $0x3f8] sm:$0xff] }
   0x7   :  { %v76_v11 = vld [vmem:[%s2532_s1 + $0x180] sm:$0xff]  ;;  %v145_v13 = vld [vmem:[%s2532_s1 + $0x3a8] sm:$0xff]  ;;  %168 = vmatpush.msra.mxu0 %v80_v6  ;;  %208 = vmatpush.msra.mxu2 %v81_v8  ;;  %v87_v6 = vld [vmem:[%s2532_s1 + $0x1d8] sm:$0xff] }
   0x8   :  { %v140_v14 = vld [vmem:[%s2532_s1 + $0x380] sm:$0xff]  ;;  %v141_v15 = vld [vmem:[%s2532_s1 + $0x388] sm:$0xff]  ;;  %188 = vmatpush.msra.mxu1 %v144_v10  ;;  %228 = vmatpush.msra.mxu3 %v145_v13  ;;  %v82_v8 = vld [vmem:[%s2532_s1 + $0x1b0] sm:$0xff] }
   0x9   :  { %v72_v16 = vld [vmem:[%s2532_s1 + $0x160] sm:$0xff]  ;;  %v73_v17 = vld [vmem:[%s2532_s1 + $0x168] sm:$0xff]  ;;  %169 = vmatpush.msra.mxu0 %v76_v11  ;;  %209 = vmatpush.msra.mxu2 %v77_v12  ;;  %v150_v9 = vld [vmem:[%s2532_s1 + $0x3d0] sm:$0xff] }
   0xa   :  { %v136_v18 = vld [vmem:[%s2532_s1 + $0x360] sm:$0xff]  ;;  %v137_v19 = vld [vmem:[%s2532_s1 + $0x368] sm:$0xff]  ;;  %189 = vmatpush.msra.mxu1 %v140_v14  ;;  %229 = vmatpush.msra.mxu3 %v141_v15  ;;  %v83_v10 = vld [vmem:[%s2532_s1 + $0x1b8] sm:$0xff] }
   0xb   :  { %v68_v20 = vld [vmem:[%s2532_s1 + $0x140] sm:$0xff]  ;;  %v69_v21 = vld [vmem:[%s2532_s1 + $0x148] sm:$0xff]  ;;  %170 = vmatpush.msra.mxu0 %v72_v16  ;;  %210 = vmatpush.msra.mxu2 %v73_v17  ;;  %v151_v11 = vld [vmem:[%s2532_s1 + $0x3d8] sm:$0xff] }
   0xc   :  { %v132_v22 = vld [vmem:[%s2532_s1 + $0x340] sm:$0xff]  ;;  %v133_v23 = vld [vmem:[%s2532_s1 + $0x348] sm:$0xff]  ;;  %190 = vmatpush.msra.mxu1 %v136_v18  ;;  %230 = vmatpush.msra.mxu3 %v137_v19  ;;  %v78_v12 = vld [vmem:[%s2532_s1 + $0x190] sm:$0xff] }
   0xd   :  { %v64_v24 = vld [vmem:[%s2532_s1 + $0x120] sm:$0xff]  ;;  %v65_v25 = vld [vmem:[%s2532_s1 + $0x128] sm:$0xff]  ;;  %171 = vmatpush.msra.mxu0 %v68_v20  ;;  %211 = vmatpush.msra.mxu2 %v69_v21  ;;  %v146_v13 = vld [vmem:[%s2532_s1 + $0x3b0] sm:$0xff] }
   0xe   :  { %v128_v26 = vld [vmem:[%s2532_s1 + $0x320] sm:$0xff]  ;;  %v129_v27 = vld [vmem:[%s2532_s1 + $0x328] sm:$0xff]  ;;  %191 = vmatpush.msra.mxu1 %v132_v22  ;;  %231 = vmatpush.msra.mxu3 %v133_v23  ;;  %v79_v14 = vld [vmem:[%s2532_s1 + $0x198] sm:$0xff] }
   0xf   :  { %v60_v28 = vld [vmem:[%s2532_s1 + $0x100] sm:$0xff]  ;;  %v61_v29 = vld [vmem:[%s2532_s1 + $0x108] sm:$0xff]  ;;  %172 = vmatpush.msra.mxu0 %v64_v24  ;;  %212 = vmatpush.msra.mxu2 %v65_v25  ;;  %v147_v15 = vld [vmem:[%s2532_s1 + $0x3b8] sm:$0xff] }
  0x10   :  { %v124_v30 = vld [vmem:[%s2532_s1 + $0x300] sm:$0xff]  ;;  %v125_v31 = vld [vmem:[%s2532_s1 + $0x308] sm:$0xff]  ;;  %192 = vmatpush.msra.mxu1 %v128_v26  ;;  %232 = vmatpush.msra.mxu3 %v129_v27  ;;  %v74_v16 = vld [vmem:[%s2532_s1 + $0x170] sm:$0xff] }
  0x11   :  { %v56_v32 = vld [vmem:[%s2532_s1 + $0xe0] sm:$0xff]  ;;  %v57_v33 = vld [vmem:[%s2532_s1 + $0xe8] sm:$0xff]  ;;  %173 = vmatpush.msra.mxu0 %v60_v28  ;;  %213 = vmatpush.msra.mxu2 %v61_v29  ;;  %v142_v17 = vld [vmem:[%s2532_s1 + $0x390] sm:$0xff] }
  0x12   :  { %v120_v34 = vld [vmem:[%s2532_s1 + $0x2e0] sm:$0xff]  ;;  %v121_v35 = vld [vmem:[%s2532_s1 + $0x2e8] sm:$0xff]  ;;  %193 = vmatpush.msra.mxu1 %v124_v30  ;;  %233 = vmatpush.msra.mxu3 %v125_v31  ;;  %v75_v18 = vld [vmem:[%s2532_s1 + $0x178] sm:$0xff] }
  0x13   :  { %v52_v36 = vld [vmem:[%s2532_s1 + $0xc0] sm:$0xff]  ;;  %v53_v37 = vld [vmem:[%s2532_s1 + $0xc8] sm:$0xff]  ;;  %174 = vmatpush.msra.mxu0 %v56_v32  ;;  %214 = vmatpush.msra.mxu2 %v57_v33  ;;  %v143_v19 = vld [vmem:[%s2532_s1 + $0x398] sm:$0xff] }
  0x14   :  { %v116_v38 = vld [vmem:[%s2532_s1 + $0x2c0] sm:$0xff]  ;;  %v117_v39 = vld [vmem:[%s2532_s1 + $0x2c8] sm:$0xff]  ;;  %194 = vmatpush.msra.mxu1 %v120_v34  ;;  %234 = vmatpush.msra.mxu3 %v121_v35  ;;  %v70_v20 = vld [vmem:[%s2532_s1 + $0x150] sm:$0xff] }
  0x15   :  { %v48_v40 = vld [vmem:[%s2532_s1 + $0xa0] sm:$0xff]  ;;  %v49_v41 = vld [vmem:[%s2532_s1 + $0xa8] sm:$0xff]  ;;  %175 = vmatpush.msra.mxu0 %v52_v36  ;;  %215 = vmatpush.msra.mxu2 %v53_v37  ;;  %v138_v21 = vld [vmem:[%s2532_s1 + $0x370] sm:$0xff] }
  0x16   :  { %v112_v42 = vld [vmem:[%s2532_s1 + $0x2a0] sm:$0xff]  ;;  %v113_v43 = vld [vmem:[%s2532_s1 + $0x2a8] sm:$0xff]  ;;  %195 = vmatpush.msra.mxu1 %v116_v38  ;;  %235 = vmatpush.msra.mxu3 %v117_v39  ;;  %v71_v22 = vld [vmem:[%s2532_s1 + $0x158] sm:$0xff] }
  0x17   :  { %v44_v44 = vld [vmem:[%s2532_s1 + $0x80] sm:$0xff]  ;;  %v45_v45 = vld [vmem:[%s2532_s1 + $0x88] sm:$0xff]  ;;  %176 = vmatpush.msra.mxu0 %v48_v40  ;;  %216 = vmatpush.msra.mxu2 %v49_v41  ;;  %v139_v23 = vld [vmem:[%s2532_s1 + $0x378] sm:$0xff] }
  0x18   :  { %v108_v46 = vld [vmem:[%s2532_s1 + $0x280] sm:$0xff]  ;;  %v109_v47 = vld [vmem:[%s2532_s1 + $0x288] sm:$0xff]  ;;  %196 = vmatpush.msra.mxu1 %v112_v42  ;;  %236 = vmatpush.msra.mxu3 %v113_v43  ;;  %v66_v24 = vld [vmem:[%s2532_s1 + $0x130] sm:$0xff] }
  0x19   :  { %v40_v48 = vld [vmem:[%s2532_s1 + $0x60] sm:$0xff]  ;;  %v41_v49 = vld [vmem:[%s2532_s1 + $0x68] sm:$0xff]  ;;  %177 = vmatpush.msra.mxu0 %v44_v44  ;;  %217 = vmatpush.msra.mxu2 %v45_v45  ;;  %v134_v25 = vld [vmem:[%s2532_s1 + $0x350] sm:$0xff] }
  0x1a   :  { %v104_v50 = vld [vmem:[%s2532_s1 + $0x260] sm:$0xff]  ;;  %v105_v51 = vld [vmem:[%s2532_s1 + $0x268] sm:$0xff]  ;;  %197 = vmatpush.msra.mxu1 %v108_v46  ;;  %237 = vmatpush.msra.mxu3 %v109_v47  ;;  %v67_v26 = vld [vmem:[%s2532_s1 + $0x138] sm:$0xff] }
  0x1b   :  { %v36_v52 = vld [vmem:[%s2532_s1 + $0x40] sm:$0xff]  ;;  %v37_v53 = vld [vmem:[%s2532_s1 + $0x48] sm:$0xff]  ;;  %178 = vmatpush.msra.mxu0 %v40_v48  ;;  %218 = vmatpush.msra.mxu2 %v41_v49  ;;  %v135_v27 = vld [vmem:[%s2532_s1 + $0x358] sm:$0xff] }
  0x1c   :  { %v100_v54 = vld [vmem:[%s2532_s1 + $0x240] sm:$0xff]  ;;  %v101_v55 = vld [vmem:[%s2532_s1 + $0x248] sm:$0xff]  ;;  %198 = vmatpush.msra.mxu1 %v104_v50  ;;  %238 = vmatpush.msra.mxu3 %v105_v51  ;;  %v62_v28 = vld [vmem:[%s2532_s1 + $0x110] sm:$0xff] }
  0x1d   :  { %v32_v56 = vld [vmem:[%s2532_s1 + $0x20] sm:$0xff]  ;;  %v33_v57 = vld [vmem:[%s2532_s1 + $0x28] sm:$0xff]  ;;  %179 = vmatpush.msra.mxu0 %v36_v52  ;;  %219 = vmatpush.msra.mxu2 %v37_v53  ;;  %v130_v29 = vld [vmem:[%s2532_s1 + $0x330] sm:$0xff] }
  0x1e   :  { %v96_v58 = vld [vmem:[%s2532_s1 + $0x220] sm:$0xff]  ;;  %v97_v59 = vld [vmem:[%s2532_s1 + $0x228] sm:$0xff]  ;;  %199 = vmatpush.msra.mxu1 %v100_v54  ;;  %239 = vmatpush.msra.mxu3 %v101_v55  ;;  %v63_v30 = vld [vmem:[%s2532_s1 + $0x118] sm:$0xff] }
  0x1f   :  { %v28_v60 = vld [vmem:[%s2532_s1] sm:$0xff]  ;;  %v29_v61 = vld [vmem:[%s2532_s1 + $0x8] sm:$0xff]  ;;  %180 = vmatpush.msra.mxu0 %v32_v56  ;;  %220 = vmatpush.msra.mxu2 %v33_v57  ;;  %v131_v31 = vld [vmem:[%s2532_s1 + $0x338] sm:$0xff] }
  0x20   :  { %v1307_v62 = vld [vmem:[%s2533_s0] sm:$0xff]  ;;  %200 = vmatpush.msra.mxu1 %v96_v58  ;;  %240 = vmatpush.msra.mxu3 %v97_v59  ;;  %v93_v2 = vld [vmem:[%s2532_s1 + $0x208] sm:$0xff]  ;;  %v58_v32 = vld [vmem:[%s2532_s1 + $0xf0] sm:$0xff] }
  0x21   :  { %181 = vmatpush.msra.mxu0 %v28_v60  ;;  %221 = vmatpush.msra.mxu2 %v29_v61  ;;  %v92_v1 = vld [vmem:[%s2532_s1 + $0x200] sm:$0xff]  ;;  %v1326_v3 = vld [vmem:[%s2533_s0 + $0x8] sm:$0xff]  ;;  %v126_v33 = vld [vmem:[%s2532_s1 + $0x310] sm:$0xff] }
  0x22   :  { %182 = vmatmul.f32.vlgmr.msra.gmra.mxu0 %v1307_v62  ;;  %222 = vmatmul.f32.vlgmr.msra.gmra.mxu2 %v1307_v62  ;;  %v59_v34 = vld [vmem:[%s2532_s1 + $0xf8] sm:$0xff]  ;;  %v54_v36 = vld [vmem:[%s2532_s1 + $0xd0] sm:$0xff] }
  0x23   :  { %246 = vmatpush.msrb.mxu0 %v90_v63  ;;  %286 = vmatpush.msrb.mxu2 %v91_v0  ;;  %v127_v35 = vld [vmem:[%s2532_s1 + $0x318] sm:$0xff]  ;;  %v122_v37 = vld [vmem:[%s2532_s1 + $0x2f0] sm:$0xff] }
  0x24   :  { %201 = vmatpush.msra.mxu1 %v92_v1  ;;  %241 = vmatpush.msra.mxu3 %v93_v2  ;;  %v55_v38 = vld [vmem:[%s2532_s1 + $0xd8] sm:$0xff]  ;;  %v50_v40 = vld [vmem:[%s2532_s1 + $0xb0] sm:$0xff] }
  0x25   :  { %202 = vmatmul.f32.vlgmr.msra.gmra.mxu1 %v1326_v3  ;;  %242 = vmatmul.f32.vlgmr.msra.gmra.mxu3 %v1326_v3  ;;  %v123_v39 = vld [vmem:[%s2532_s1 + $0x2f8] sm:$0xff]  ;;  %v118_v41 = vld [vmem:[%s2532_s1 + $0x2d0] sm:$0xff] }
  0x26   :  { %247 = vmatpush.msrb.mxu0 %v86_v4  ;;  %266 = vmatpush.msrb.mxu1 %v154_v5  ;;  %v51_v42 = vld [vmem:[%s2532_s1 + $0xb8] sm:$0xff]  ;;  %v46_v44 = vld [vmem:[%s2532_s1 + $0x90] sm:$0xff]  ;;  %v390_v4 = vld [vmem:[%s2534_s3 + $0x1e0] sm:$0xff] }
  0x27   :  { %287 = vmatpush.msrb.mxu2 %v87_v6  ;;  %306 = vmatpush.msrb.mxu3 %v155_v7  ;;  %v119_v43 = vld [vmem:[%s2532_s1 + $0x2d8] sm:$0xff]  ;;  %v114_v45 = vld [vmem:[%s2532_s1 + $0x2b0] sm:$0xff]  ;;  %v454_v5 = vld [vmem:[%s2534_s3 + $0x3e0] sm:$0xff] }
  0x28   :  { %248 = vmatpush.msrb.mxu0 %v82_v8  ;;  %267 = vmatpush.msrb.mxu1 %v150_v9  ;;  %v47_v46 = vld [vmem:[%s2532_s1 + $0x98] sm:$0xff]  ;;  %v42_v48 = vld [vmem:[%s2532_s1 + $0x70] sm:$0xff]  ;;  %v518_v6 = vld [vmem:[%s2534_s3 + $0x5e0] sm:$0xff] }
  0x29   :  { %288 = vmatpush.msrb.mxu2 %v83_v10  ;;  %307 = vmatpush.msrb.mxu3 %v151_v11  ;;  %v115_v47 = vld [vmem:[%s2532_s1 + $0x2b8] sm:$0xff]  ;;  %v110_v49 = vld [vmem:[%s2532_s1 + $0x290] sm:$0xff]  ;;  %v450_v7 = vld [vmem:[%s2534_s3 + $0x3c0] sm:$0xff] }
  0x2a   :  { %249 = vmatpush.msrb.mxu0 %v78_v12  ;;  %268 = vmatpush.msrb.mxu1 %v146_v13  ;;  %v43_v50 = vld [vmem:[%s2532_s1 + $0x78] sm:$0xff]  ;;  %v38_v52 = vld [vmem:[%s2532_s1 + $0x50] sm:$0xff]  ;;  %v514_v8 = vld [vmem:[%s2534_s3 + $0x5c0] sm:$0xff] }
  0x2b   :  { %289 = vmatpush.msrb.mxu2 %v79_v14  ;;  %308 = vmatpush.msrb.mxu3 %v147_v15  ;;  %v111_v51 = vld [vmem:[%s2532_s1 + $0x298] sm:$0xff]  ;;  %v106_v53 = vld [vmem:[%s2532_s1 + $0x270] sm:$0xff]  ;;  %v382_v9 = vld [vmem:[%s2534_s3 + $0x1a0] sm:$0xff] }
  0x2c   :  { %250 = vmatpush.msrb.mxu0 %v74_v16  ;;  %269 = vmatpush.msrb.mxu1 %v142_v17  ;;  %v39_v54 = vld [vmem:[%s2532_s1 + $0x58] sm:$0xff]  ;;  %v34_v56 = vld [vmem:[%s2532_s1 + $0x30] sm:$0xff]  ;;  %v510_v10 = vld [vmem:[%s2534_s3 + $0x5a0] sm:$0xff] }
  0x2d   :  { %290 = vmatpush.msrb.mxu2 %v75_v18  ;;  %309 = vmatpush.msrb.mxu3 %v143_v19  ;;  %v107_v55 = vld [vmem:[%s2532_s1 + $0x278] sm:$0xff]  ;;  %v102_v57 = vld [vmem:[%s2532_s1 + $0x250] sm:$0xff]  ;;  %v378_v11 = vld [vmem:[%s2534_s3 + $0x180] sm:$0xff] }
  0x2e   :  { %251 = vmatpush.msrb.mxu0 %v70_v20  ;;  %270 = vmatpush.msrb.mxu1 %v138_v21  ;;  %v35_v58 = vld [vmem:[%s2532_s1 + $0x38] sm:$0xff]  ;;  %v30_v60 = vld [vmem:[%s2532_s1 + $0x10] sm:$0xff]  ;;  %v442_v12 = vld [vmem:[%s2534_s3 + $0x380] sm:$0xff] }
  0x2f   :  { %291 = vmatpush.msrb.mxu2 %v71_v22  ;;  %310 = vmatpush.msrb.mxu3 %v139_v23  ;;  %v103_v59 = vld [vmem:[%s2532_s1 + $0x258] sm:$0xff]  ;;  %v98_v61 = vld [vmem:[%s2532_s1 + $0x230] sm:$0xff]  ;;  %v582_v13 = vld [vmem:[%s2534_s3 + $0x7e0] sm:$0xff] }
  0x30   :  { %252 = vmatpush.msrb.mxu0 %v66_v24  ;;  %271 = vmatpush.msrb.mxu1 %v134_v25  ;;  %v31_v63 = vld [vmem:[%s2532_s1 + $0x18] sm:$0xff]  ;;  %v94_v1 = vld [vmem:[%s2532_s1 + $0x210] sm:$0xff]  ;;  %v506_v14 = vld [vmem:[%s2534_s3 + $0x580] sm:$0xff] }
  0x31   :  { %292 = vmatpush.msrb.mxu2 %v67_v26  ;;  %311 = vmatpush.msrb.mxu3 %v135_v27  ;;  %v99_v0 = vld [vmem:[%s2532_s1 + $0x238] sm:$0xff]  ;;  %v374_v15 = vld [vmem:[%s2534_s3 + $0x160] sm:$0xff] }
  0x32   :  { %253 = vmatpush.msrb.mxu0 %v62_v28  ;;  %272 = vmatpush.msrb.mxu1 %v130_v29  ;;  %v95_v2 = vld [vmem:[%s2532_s1 + $0x218] sm:$0xff]  ;;  %v438_v16 = vld [vmem:[%s2534_s3 + $0x360] sm:$0xff] }
  0x33   :  { %293 = vmatpush.msrb.mxu2 %v63_v30  ;;  %312 = vmatpush.msrb.mxu3 %v131_v31  ;;  %v578_v17 = vld [vmem:[%s2534_s3 + $0x7c0] sm:$0xff] }
  0x34   :  { %254 = vmatpush.msrb.mxu0 %v58_v32  ;;  %273 = vmatpush.msrb.mxu1 %v126_v33  ;;  %v502_v18 = vld [vmem:[%s2534_s3 + $0x560] sm:$0xff] }
  0x35   :  { %294 = vmatpush.msrb.mxu2 %v59_v34  ;;  %313 = vmatpush.msrb.mxu3 %v127_v35  ;;  %v370_v19 = vld [vmem:[%s2534_s3 + $0x140] sm:$0xff] }
  0x36   :  { %255 = vmatpush.msrb.mxu0 %v54_v36  ;;  %274 = vmatpush.msrb.mxu1 %v122_v37  ;;  %v434_v20 = vld [vmem:[%s2534_s3 + $0x340] sm:$0xff] }
  0x37   :  { %295 = vmatpush.msrb.mxu2 %v55_v38  ;;  %314 = vmatpush.msrb.mxu3 %v123_v39  ;;  %v574_v21 = vld [vmem:[%s2534_s3 + $0x7a0] sm:$0xff] }
  0x38   :  { %256 = vmatpush.msrb.mxu0 %v50_v40  ;;  %275 = vmatpush.msrb.mxu1 %v118_v41  ;;  %v498_v22 = vld [vmem:[%s2534_s3 + $0x540] sm:$0xff] }
  0x39   :  { %296 = vmatpush.msrb.mxu2 %v51_v42  ;;  %315 = vmatpush.msrb.mxu3 %v119_v43  ;;  %v366_v23 = vld [vmem:[%s2534_s3 + $0x120] sm:$0xff] }
  0x3a   :  { %257 = vmatpush.msrb.mxu0 %v46_v44  ;;  %276 = vmatpush.msrb.mxu1 %v114_v45  ;;  %v430_v24 = vld [vmem:[%s2534_s3 + $0x320] sm:$0xff] }
  0x3b   :  { %297 = vmatpush.msrb.mxu2 %v47_v46  ;;  %316 = vmatpush.msrb.mxu3 %v115_v47  ;;  %v570_v25 = vld [vmem:[%s2534_s3 + $0x780] sm:$0xff] }
  0x3c   :  { %258 = vmatpush.msrb.mxu0 %v42_v48  ;;  %277 = vmatpush.msrb.mxu1 %v110_v49  ;;  %v494_v26 = vld [vmem:[%s2534_s3 + $0x520] sm:$0xff] }
  0x3d   :  { %298 = vmatpush.msrb.mxu2 %v43_v50  ;;  %317 = vmatpush.msrb.mxu3 %v111_v51  ;;  %v362_v27 = vld [vmem:[%s2534_s3 + $0x100] sm:$0xff] }
  0x3e   :  { %259 = vmatpush.msrb.mxu0 %v38_v52  ;;  %278 = vmatpush.msrb.mxu1 %v106_v53  ;;  %v426_v28 = vld [vmem:[%s2534_s3 + $0x300] sm:$0xff] }
  0x3f   :  { %299 = vmatpush.msrb.mxu2 %v39_v54  ;;  %318 = vmatpush.msrb.mxu3 %v107_v55  ;;  %v566_v29 = vld [vmem:[%s2534_s3 + $0x760] sm:$0xff]  ;;  %v391_v55 = vld [vmem:[%s2534_s3 + $0x1e8] sm:$0xff] }
  0x40   :  { %260 = vmatpush.msrb.mxu0 %v34_v56  ;;  %279 = vmatpush.msrb.mxu1 %v102_v57  ;;  %v490_v30 = vld [vmem:[%s2534_s3 + $0x500] sm:$0xff]  ;;  %v455_v56 = vld [vmem:[%s2534_s3 + $0x3e8] sm:$0xff] }
  0x41   :  { %300 = vmatpush.msrb.mxu2 %v35_v58  ;;  %319 = vmatpush.msrb.mxu3 %v103_v59  ;;  %v358_v31 = vld [vmem:[%s2534_s3 + $0xe0] sm:$0xff]  ;;  %v387_v57 = vld [vmem:[%s2534_s3 + $0x1c8] sm:$0xff] }
  0x42   :  { %261 = vmatpush.msrb.mxu0 %v30_v60  ;;  %280 = vmatpush.msrb.mxu1 %v98_v61  ;;  %v422_v32 = vld [vmem:[%s2534_s3 + $0x2e0] sm:$0xff]  ;;  %v451_v58 = vld [vmem:[%s2534_s3 + $0x3c8] sm:$0xff] }
  0x43   :  { %301 = vmatpush.msrb.mxu2 %v31_v63  ;;  %320 = vmatpush.msrb.mxu3 %v99_v0  ;;  %v562_v33 = vld [vmem:[%s2534_s3 + $0x740] sm:$0xff]  ;;  %v383_v59 = vld [vmem:[%s2534_s3 + $0x1a8] sm:$0xff] }
  0x44   :  { %262 = vmatmul.f32.vlgmr.msrb.gmra.mxu0 %v1307_v62  ;;  %302 = vmatmul.f32.vlgmr.msrb.gmra.mxu2 %v1307_v62  ;;  %v386_v62 = vld [vmem:[%s2534_s3 + $0x1c0] sm:$0xff]  ;;  %v447_v60 = vld [vmem:[%s2534_s3 + $0x3a8] sm:$0xff] }
  0x45   :  { %281 = vmatpush.msrb.mxu1 %v94_v1  ;;  %321 = vmatpush.msrb.mxu3 %v95_v2  ;;  %v486_v34 = vld [vmem:[%s2534_s3 + $0x4e0] sm:$0xff]  ;;  %v379_v61 = vld [vmem:[%s2534_s3 + $0x188] sm:$0xff] }
  0x46   :  { %282 = vmatmul.f32.vlgmr.msrb.gmra.mxu1 %v1326_v3  ;;  %322 = vmatmul.f32.vlgmr.msrb.gmra.mxu3 %v1326_v3  ;;  %v446_v3 = vld [vmem:[%s2534_s3 + $0x3a0] sm:$0xff]  ;;  %v443_v63 = vld [vmem:[%s2534_s3 + $0x388] sm:$0xff] }
  0x47   :  { %596 = vmatpush.msra.mxu0 %v390_v4  ;;  %616 = vmatpush.msra.mxu1 %v454_v5  ;;  %v354_v35 = vld [vmem:[%s2534_s3 + $0xc0] sm:$0xff]  ;;  %v375_v0 = vld [vmem:[%s2534_s3 + $0x168] sm:$0xff] }
  0x48   :  { %636 = vmatpush.msra.mxu2 %v518_v6  ;;  %656 = vmatpush.msra.mxu3 %v582_v13  ;;  %v418_v36 = vld [vmem:[%s2534_s3 + $0x2c0] sm:$0xff]  ;;  %v439_v1 = vld [vmem:[%s2534_s3 + $0x368] sm:$0xff] }
  0x49   :  { %597 = vmatpush.msra.mxu0 %v386_v62  ;;  %617 = vmatpush.msra.mxu1 %v450_v7  ;;  %v558_v37 = vld [vmem:[%s2534_s3 + $0x720] sm:$0xff]  ;;  %v371_v2 = vld [vmem:[%s2534_s3 + $0x148] sm:$0xff] }
  0x4a   :  { %637 = vmatpush.msra.mxu2 %v514_v8  ;;  %657 = vmatpush.msra.mxu3 %v578_v17  ;;  %v482_v38 = vld [vmem:[%s2534_s3 + $0x4c0] sm:$0xff]  ;;  %v435_v4 = vld [vmem:[%s2534_s3 + $0x348] sm:$0xff] }
  0x4b   :  { %598 = vmatpush.msra.mxu0 %v382_v9  ;;  %618 = vmatpush.msra.mxu1 %v446_v3  ;;  %v350_v39 = vld [vmem:[%s2534_s3 + $0xa0] sm:$0xff]  ;;  %v367_v5 = vld [vmem:[%s2534_s3 + $0x128] sm:$0xff] }
  0x4c   :  { %638 = vmatpush.msra.mxu2 %v510_v10  ;;  %658 = vmatpush.msra.mxu3 %v574_v21  ;;  %v414_v40 = vld [vmem:[%s2534_s3 + $0x2a0] sm:$0xff]  ;;  %v431_v6 = vld [vmem:[%s2534_s3 + $0x328] sm:$0xff] }
  0x4d   :  { %599 = vmatpush.msra.mxu0 %v378_v11  ;;  %619 = vmatpush.msra.mxu1 %v442_v12  ;;  %v554_v41 = vld [vmem:[%s2534_s3 + $0x700] sm:$0xff]  ;;  %v363_v62 = vld [vmem:[%s2534_s3 + $0x108] sm:$0xff] }
  0x4e   :  { %639 = vmatpush.msra.mxu2 %v506_v14  ;;  %659 = vmatpush.msra.mxu3 %v570_v25  ;;  %v478_v42 = vld [vmem:[%s2534_s3 + $0x4a0] sm:$0xff]  ;;  %v427_v7 = vld [vmem:[%s2534_s3 + $0x308] sm:$0xff] }
  0x4f   :  { %600 = vmatpush.msra.mxu0 %v374_v15  ;;  %620 = vmatpush.msra.mxu1 %v438_v16  ;;  %v346_v43 = vld [vmem:[%s2534_s3 + $0x80] sm:$0xff]  ;;  %v359_v8 = vld [vmem:[%s2534_s3 + $0xe8] sm:$0xff] }
  0x50   :  { %640 = vmatpush.msra.mxu2 %v502_v18  ;;  %660 = vmatpush.msra.mxu3 %v566_v29  ;;  %v410_v44 = vld [vmem:[%s2534_s3 + $0x280] sm:$0xff]  ;;  %v423_v9 = vld [vmem:[%s2534_s3 + $0x2e8] sm:$0xff] }
  0x51   :  { %601 = vmatpush.msra.mxu0 %v370_v19  ;;  %621 = vmatpush.msra.mxu1 %v434_v20  ;;  %v550_v45 = vld [vmem:[%s2534_s3 + $0x6e0] sm:$0xff]  ;;  %v355_v3 = vld [vmem:[%s2534_s3 + $0xc8] sm:$0xff] }
  0x52   :  { %641 = vmatpush.msra.mxu2 %v498_v22  ;;  %661 = vmatpush.msra.mxu3 %v562_v33  ;;  %v474_v46 = vld [vmem:[%s2534_s3 + $0x480] sm:$0xff]  ;;  %v351_v10 = vld [vmem:[%s2534_s3 + $0xa8] sm:$0xff] }
  0x53   :  { %602 = vmatpush.msra.mxu0 %v366_v23  ;;  %622 = vmatpush.msra.mxu1 %v430_v24  ;;  %v342_v47 = vld [vmem:[%s2534_s3 + $0x60] sm:$0xff]  ;;  %v347_v11 = vld [vmem:[%s2534_s3 + $0x88] sm:$0xff] }
  0x54   :  { %642 = vmatpush.msra.mxu2 %v494_v26  ;;  %662 = vmatpush.msra.mxu3 %v558_v37  ;;  %v406_v48 = vld [vmem:[%s2534_s3 + $0x260] sm:$0xff]  ;;  %v343_v14 = vld [vmem:[%s2534_s3 + $0x68] sm:$0xff] }
  0x55   :  { %603 = vmatpush.msra.mxu0 %v362_v27  ;;  %623 = vmatpush.msra.mxu1 %v426_v28  ;;  %v338_v49 = vld [vmem:[%s2534_s3 + $0x40] sm:$0xff]  ;;  %v419_v15 = vld [vmem:[%s2534_s3 + $0x2c8] sm:$0xff] }
  0x56   :  { %643 = vmatpush.msra.mxu2 %v490_v30  ;;  %663 = vmatpush.msra.mxu3 %v554_v41  ;;  %v402_v50 = vld [vmem:[%s2534_s3 + $0x240] sm:$0xff]  ;;  %v339_v18 = vld [vmem:[%s2534_s3 + $0x48] sm:$0xff] }
  0x57   :  { %604 = vmatpush.msra.mxu0 %v358_v31  ;;  %624 = vmatpush.msra.mxu1 %v422_v32  ;;  %v334_v51 = vld [vmem:[%s2534_s3 + $0x20] sm:$0xff]  ;;  %v415_v19 = vld [vmem:[%s2534_s3 + $0x2a8] sm:$0xff] }
  0x58   :  { %644 = vmatpush.msra.mxu2 %v486_v34  ;;  %664 = vmatpush.msra.mxu3 %v550_v45  ;;  %v398_v52 = vld [vmem:[%s2534_s3 + $0x220] sm:$0xff]  ;;  %v335_v22 = vld [vmem:[%s2534_s3 + $0x28] sm:$0xff] }
  0x59   :  { %605 = vmatpush.msra.mxu0 %v354_v35  ;;  %625 = vmatpush.msra.mxu1 %v418_v36  ;;  %v330_v53 = vld [vmem:[%s2534_s3] sm:$0xff]  ;;  %v411_v23 = vld [vmem:[%s2534_s3 + $0x288] sm:$0xff] }
  0x5a   :  { %645 = vmatpush.msra.mxu2 %v482_v38  ;;  %v394_v54 = vld [vmem:[%s2534_s3 + $0x200] sm:$0xff]  ;;  %v331_v26 = vld [vmem:[%s2534_s3 + $0x8] sm:$0xff] }
  0x5b   :  { %606 = vmatpush.msra.mxu0 %v350_v39  ;;  %626 = vmatpush.msra.mxu1 %v414_v40  ;;  %v470_v12 = vld [vmem:[%s2534_s3 + $0x460] sm:$0xff]  ;;  %v407_v27 = vld [vmem:[%s2534_s3 + $0x268] sm:$0xff] }
  0x5c   :  { %646 = vmatpush.msra.mxu2 %v478_v42  ;;  %v546_v13 = vld [vmem:[%s2534_s3 + $0x6c0] sm:$0xff]  ;;  %v519_v28 = vld [vmem:[%s2534_s3 + $0x5e8] sm:$0xff] }
  0x5d   :  { %607 = vmatpush.msra.mxu0 %v346_v43  ;;  %627 = vmatpush.msra.mxu1 %v410_v44  ;;  %v466_v16 = vld [vmem:[%s2534_s3 + $0x440] sm:$0xff]  ;;  %v403_v30 = vld [vmem:[%s2534_s3 + $0x248] sm:$0xff] }
  0x5e   :  { %647 = vmatpush.msra.mxu2 %v474_v46  ;;  %665 = vmatpush.msra.mxu3 %v546_v13  ;;  %v542_v17 = vld [vmem:[%s2534_s3 + $0x6a0] sm:$0xff]  ;;  %v515_v31 = vld [vmem:[%s2534_s3 + $0x5c8] sm:$0xff]  ;;  %v384_v13 = vld [vmem:[%s2534_s3 + $0x1b0] sm:$0xff] }
  0x5f   :  { %608 = vmatpush.msra.mxu0 %v342_v47  ;;  %628 = vmatpush.msra.mxu1 %v406_v48  ;;  %v462_v20 = vld [vmem:[%s2534_s3 + $0x420] sm:$0xff]  ;;  %v399_v33 = vld [vmem:[%s2534_s3 + $0x228] sm:$0xff] }
  0x60   :  { %648 = vmatpush.msra.mxu2 %v470_v12  ;;  %666 = vmatpush.msra.mxu3 %v542_v17  ;;  %v538_v21 = vld [vmem:[%s2534_s3 + $0x680] sm:$0xff]  ;;  %v511_v34 = vld [vmem:[%s2534_s3 + $0x5a8] sm:$0xff]  ;;  %v456_v17 = vld [vmem:[%s2534_s3 + $0x3f0] sm:$0xff] }
  0x61   :  { %609 = vmatpush.msra.mxu0 %v338_v49  ;;  %629 = vmatpush.msra.mxu1 %v402_v50  ;;  %v458_v24 = vld [vmem:[%s2534_s3 + $0x400] sm:$0xff]  ;;  %v395_v36 = vld [vmem:[%s2534_s3 + $0x208] sm:$0xff] }
  0x62   :  { %649 = vmatpush.msra.mxu2 %v466_v16  ;;  %667 = vmatpush.msra.mxu3 %v538_v21  ;;  %v534_v25 = vld [vmem:[%s2534_s3 + $0x660] sm:$0xff]  ;;  %v507_v37 = vld [vmem:[%s2534_s3 + $0x588] sm:$0xff]  ;;  %v380_v16 = vld [vmem:[%s2534_s3 + $0x190] sm:$0xff] }
  0x63   :  { %610 = vmatpush.msra.mxu0 %v334_v51  ;;  %630 = vmatpush.msra.mxu1 %v398_v52  ;;  %v530_v29 = vld [vmem:[%s2534_s3 + $0x640] sm:$0xff]  ;;  %v583_v38 = vld [vmem:[%s2534_s3 + $0x7e8] sm:$0xff] }
  0x64   :  { %650 = vmatpush.msra.mxu2 %v462_v20  ;;  %668 = vmatpush.msra.mxu3 %v534_v25  ;;  %v526_v32 = vld [vmem:[%s2534_s3 + $0x620] sm:$0xff]  ;;  %v579_v39 = vld [vmem:[%s2534_s3 + $0x7c8] sm:$0xff]  ;;  %v452_v20 = vld [vmem:[%s2534_s3 + $0x3d0] sm:$0xff] }
  0x65   :  { %611 = vmatpush.msra.mxu0 %v330_v53  ;;  %631 = vmatpush.msra.mxu1 %v394_v54  ;;  %v522_v35 = vld [vmem:[%s2534_s3 + $0x600] sm:$0xff]  ;;  %v503_v40 = vld [vmem:[%s2534_s3 + $0x568] sm:$0xff]  ;;  %v444_v25 = vld [vmem:[%s2534_s3 + $0x390] sm:$0xff] }
  0x66   :  { %651 = vmatpush.msra.mxu2 %v458_v24  ;;  %669 = vmatpush.msra.mxu3 %v530_v29  ;;  %v575_v41 = vld [vmem:[%s2534_s3 + $0x7a8] sm:$0xff]  ;;  %v1859_v50 = vld [vmem:[%s2535_s2] sm:$0xf]  ;;  %v368_v24 = vld [vmem:[%s2534_s3 + $0x130] sm:$0xff] }
  0x67   :  { %676 = vmatpush.msrb.mxu0 %v391_v55  ;;  %696 = vmatpush.msrb.mxu1 %v455_v56  ;;  %v499_v42 = vld [vmem:[%s2534_s3 + $0x548] sm:$0xff]  ;;  %v158_v54 = vperm.slane %v1859_v50, 0  ;;  %v436_v29 = vld [vmem:[%s2534_s3 + $0x350] sm:$0xff] }
  0x68   :  { %716 = vmatpush.msrb.mxu2 %v519_v28  ;;  %670 = vmatpush.msra.mxu3 %v526_v32  ;;  %v571_v43 = vld [vmem:[%s2534_s3 + $0x788] sm:$0xff]  ;;  %v360_v28 = vld [vmem:[%s2534_s3 + $0xf0] sm:$0xff] }
  0x69   :  { %677 = vmatpush.msrb.mxu0 %v387_v57  ;;  %697 = vmatpush.msrb.mxu1 %v451_v58  ;;  %v495_v44 = vld [vmem:[%s2534_s3 + $0x528] sm:$0xff]  ;;  %v352_v32 = vld [vmem:[%s2534_s3 + $0xb0] sm:$0xff] }
  0x6a   :  { %717 = vmatpush.msrb.mxu2 %v515_v31  ;;  %671 = vmatpush.msra.mxu3 %v522_v35  ;;  %v567_v45 = vld [vmem:[%s2534_s3 + $0x768] sm:$0xff]  ;;  %v432_v31 = vld [vmem:[%s2534_s3 + $0x330] sm:$0xff] }
  0x6b   :  { %678 = vmatpush.msrb.mxu0 %v383_v59  ;;  %698 = vmatpush.msrb.mxu1 %v447_v60  ;;  %v491_v46 = vld [vmem:[%s2534_s3 + $0x508] sm:$0xff]  ;;  %v424_v35 = vld [vmem:[%s2534_s3 + $0x2f0] sm:$0xff] }
  0x6c   :  { %718 = vmatpush.msrb.mxu2 %v511_v34  ;;  %736 = vmatpush.msrb.mxu3 %v583_v38  ;;  %v563_v47 = vld [vmem:[%s2534_s3 + $0x748] sm:$0xff]  ;;  %v348_v34 = vld [vmem:[%s2534_s3 + $0x90] sm:$0xff]  ;;  %v160_v38 = vperm.slane %v1859_v50, 2 }
  0x6d   :  { %679 = vmatpush.msrb.mxu0 %v379_v61  ;;  %699 = vmatpush.msrb.mxu1 %v443_v63  ;;  %v487_v48 = vld [vmem:[%s2534_s3 + $0x4e8] sm:$0xff]  ;;  %v159_v63 = vperm.slane %v1859_v50, 1 }
  0x6e   :  { %719 = vmatpush.msrb.mxu2 %v507_v37  ;;  %737 = vmatpush.msrb.mxu3 %v579_v39  ;;  %v559_v49 = vld [vmem:[%s2534_s3 + $0x728] sm:$0xff]  ;;  %v420_v37 = vld [vmem:[%s2534_s3 + $0x2d0] sm:$0xff] }
  0x6f   :  { %680 = vmatpush.msrb.mxu0 %v375_v0  ;;  %700 = vmatpush.msrb.mxu1 %v439_v1  ;;  %v483_v51 = vld [vmem:[%s2534_s3 + $0x4c8] sm:$0xff]  ;;  %v340_v39 = vld [vmem:[%s2534_s3 + $0x50] sm:$0xff] }
  0x70   :  { %720 = vmatpush.msrb.mxu2 %v503_v40  ;;  %738 = vmatpush.msrb.mxu3 %v575_v41  ;;  %v555_v52 = vld [vmem:[%s2534_s3 + $0x708] sm:$0xff]  ;;  %v416_v40 = vld [vmem:[%s2534_s3 + $0x2b0] sm:$0xff] }
  0x71   :  { %681 = vmatpush.msrb.mxu0 %v371_v2  ;;  %701 = vmatpush.msrb.mxu1 %v435_v4  ;;  %v479_v53 = vld [vmem:[%s2534_s3 + $0x4a8] sm:$0xff] }
  0x72   :  { %721 = vmatpush.msrb.mxu2 %v499_v42  ;;  %739 = vmatpush.msrb.mxu3 %v571_v43  ;;  %v551_v55 = vld [vmem:[%s2534_s3 + $0x6e8] sm:$0xff]  ;;  %v336_v42 = vld [vmem:[%s2534_s3 + $0x30] sm:$0xff] }
  0x73   :  { %682 = vmatpush.msrb.mxu0 %v367_v5  ;;  %702 = vmatpush.msrb.mxu1 %v431_v6  ;;  %v475_v56 = vld [vmem:[%s2534_s3 + $0x488] sm:$0xff]  ;;  %v412_v43 = vld [vmem:[%s2534_s3 + $0x290] sm:$0xff] }
  0x74   :  { %722 = vmatpush.msrb.mxu2 %v495_v44  ;;  %740 = vmatpush.msrb.mxu3 %v567_v45  ;;  %v471_v59 = vld [vmem:[%s2534_s3 + $0x468] sm:$0xff] }
  0x75   :  { %683 = vmatpush.msrb.mxu0 %v363_v62  ;;  %703 = vmatpush.msrb.mxu1 %v427_v7  ;;  %v547_v60 = vld [vmem:[%s2534_s3 + $0x6c8] sm:$0xff]  ;;  %v392_v7 = vld [vmem:[%s2534_s3 + $0x1f0] sm:$0xff] }
  0x76   :  { %723 = vmatpush.msrb.mxu2 %v491_v46  ;;  %741 = vmatpush.msrb.mxu3 %v563_v47  ;;  %v467_v0 = vld [vmem:[%s2534_s3 + $0x448] sm:$0xff]  ;;  %v332_v46 = vld [vmem:[%s2534_s3 + $0x10] sm:$0xff] }
  0x77   :  { %684 = vmatpush.msrb.mxu0 %v359_v8  ;;  %704 = vmatpush.msrb.mxu1 %v423_v9  ;;  %v543_v1 = vld [vmem:[%s2534_s3 + $0x6a8] sm:$0xff]  ;;  %v408_v47 = vld [vmem:[%s2534_s3 + $0x270] sm:$0xff] }
  0x78   :  { %724 = vmatpush.msrb.mxu2 %v487_v48  ;;  %742 = vmatpush.msrb.mxu3 %v559_v49  ;;  %v463_v4 = vld [vmem:[%s2534_s3 + $0x428] sm:$0xff]  ;;  %v161_v49 = vperm.slane %v1859_v50, 3  ;;  %v389_v50 = vld [vmem:[%s2534_s3 + $0x1d8] sm:$0xff] }
  0x79   :  { %685 = vmatpush.msrb.mxu0 %v355_v3  ;;  %705 = vmatpush.msrb.mxu1 %v419_v15  ;;  %v539_v5 = vld [vmem:[%s2534_s3 + $0x688] sm:$0xff] }
  0x7a   :  { %725 = vmatpush.msrb.mxu2 %v483_v51  ;;  %743 = vmatpush.msrb.mxu3 %v555_v52  ;;  %v459_v9 = vld [vmem:[%s2534_s3 + $0x408] sm:$0xff]  ;;  %v393_v51 = vld [vmem:[%s2534_s3 + $0x1f8] sm:$0xff] }
  0x7b   :  { %686 = vmatpush.msrb.mxu0 %v351_v10  ;;  %706 = vmatpush.msrb.mxu1 %v415_v19  ;;  %v535_v3 = vld [vmem:[%s2534_s3 + $0x668] sm:$0xff]  ;;  %v388_v10 = vld [vmem:[%s2534_s3 + $0x1d0] sm:$0xff] }
  0x7c   :  { %726 = vmatpush.msrb.mxu2 %v479_v53  ;;  %744 = vmatpush.msrb.mxu3 %v551_v55  ;;  %v376_v19 = vld [vmem:[%s2534_s3 + $0x170] sm:$0xff]  ;;  %v523_v21 = vld [vmem:[%s2534_s3 + $0x608] sm:$0xff] }
  0x7d   :  { %687 = vmatpush.msrb.mxu0 %v347_v11  ;;  %707 = vmatpush.msrb.mxu1 %v411_v23  ;;  %v448_v23 = vld [vmem:[%s2534_s3 + $0x3b0] sm:$0xff] }
  0x7e   :  { %727 = vmatpush.msrb.mxu2 %v475_v56  ;;  %745 = vmatpush.msrb.mxu3 %v547_v60  ;;  %v520_v53 = vld [vmem:[%s2534_s3 + $0x5f0] sm:$0xff]  ;;  %v385_v60 = vld [vmem:[%s2534_s3 + $0x1b8] sm:$0xff] }
  0x7f   :  { %688 = vmatpush.msrb.mxu0 %v343_v14  ;;  %708 = vmatpush.msrb.mxu1 %v407_v27  ;;  %v531_v14 = vld [vmem:[%s2534_s3 + $0x648] sm:$0xff]  ;;  %v440_v27 = vld [vmem:[%s2534_s3 + $0x370] sm:$0xff] }
  0x80   :  { %728 = vmatpush.msrb.mxu2 %v471_v59  ;;  %746 = vmatpush.msrb.mxu3 %v543_v1 }
  0x81   :  { %689 = vmatpush.msrb.mxu0 %v339_v18  ;;  %709 = vmatpush.msrb.mxu1 %v403_v30  ;;  %v527_v18 = vld [vmem:[%s2534_s3 + $0x628] sm:$0xff]  ;;  %v356_v30 = vld [vmem:[%s2534_s3 + $0xd0] sm:$0xff] }
  0x82   :  { %729 = vmatpush.msrb.mxu2 %v467_v0  ;;  %747 = vmatpush.msrb.mxu3 %v539_v5  ;;  %v396_v0 = vld [vmem:[%s2534_s3 + $0x210] sm:$0xff]  ;;  %v381_v5 = vld [vmem:[%s2534_s3 + $0x198] sm:$0xff] }
  0x83   :  { %690 = vmatpush.msrb.mxu0 %v335_v22  ;;  %710 = vmatpush.msrb.mxu1 %v399_v33  ;;  %v372_v22 = vld [vmem:[%s2534_s3 + $0x150] sm:$0xff] }
  0x84   :  { %730 = vmatpush.msrb.mxu2 %v463_v4  ;;  %748 = vmatpush.msrb.mxu3 %v535_v3  ;;  %v428_v33 = vld [vmem:[%s2534_s3 + $0x310] sm:$0xff]  ;;  %v453_v3 = vld [vmem:[%s2534_s3 + $0x3d8] sm:$0xff] }
  0x85   :  { %691 = vmatpush.msrb.mxu0 %v331_v26  ;;  %711 = vmatpush.msrb.mxu1 %v395_v36  ;;  %v364_v26 = vld [vmem:[%s2534_s3 + $0x110] sm:$0xff] }
  0x86   :  { %731 = vmatpush.msrb.mxu2 %v459_v9  ;;  %749 = vmatpush.msrb.mxu3 %v531_v14  ;;  %v344_v36 = vld [vmem:[%s2534_s3 + $0x70] sm:$0xff]  ;;  %v377_v9 = vld [vmem:[%s2534_s3 + $0x178] sm:$0xff] }
  0x87   :  { %v584_v4 = vld [vmem:[%s2534_s3 + $0x7f0] sm:$0xff] }
  0x88   :  { %750 = vmatpush.msrb.mxu3 %v527_v18  ;;  %v572_v14 = vld [vmem:[%s2534_s3 + $0x790] sm:$0xff]  ;;  %v445_v18 = vld [vmem:[%s2534_s3 + $0x398] sm:$0xff] }
  0x8a   :  { %751 = vmatpush.msrb.mxu3 %v523_v21  ;;  %v365_v21 = vld [vmem:[%s2534_s3 + $0x118] sm:$0xff] }
  0x9f   :  { %v183_v57 = vpop.f32.mrf.mxu0 }
  0xa0   :  { %v184_v58 = vadd.f32 %v183_v57, %v158_v54  ;;  %v404_v54 = vld [vmem:[%s2534_s3 + $0x250] sm:$0xff] }
  0xa1   :  { %v516_v57 = vld [vmem:[%s2534_s3 + $0x5d0] sm:$0xff] }
  0xa2   :  { %v203_v61 = vpop.f32.mrf.mxu1 }
  0xa3   :  { %v204_v2 = vadd.f32 %v203_v61, %v184_v58  ;;  %v400_v58 = vld [vmem:[%s2534_s3 + $0x230] sm:$0xff] }
  0xa5   :  { %v1896_v6 = vmax.f32 %v204_v2, 0.0  ;;  %v223_v62 = vpop.f32.mrf.mxu2  ;;  %v508_v2 = vld [vmem:[%s2534_s3 + $0x590] sm:$0xff] }
  0xa6   :  { %v224_v8 = vadd.f32 %v223_v62, %v159_v63  ;;  %v512_v63 = vld [vmem:[%s2534_s3 + $0x5b0] sm:$0xff]  ;;  %v457_v62 = vld [vmem:[%s2534_s3 + $0x3f8] sm:$0xff] }
  0xa7   :  { %612 = vmatmul.f32.vlgmr.msra.gmra.mxu0 %v1896_v6 }
  0xa8   :  { %756 = vmatpush.msra.mxu0 %v392_v7  ;;  %v243_v11 = vpop.f32.mrf.mxu3  ;;  %v580_v7 = vld [vmem:[%s2534_s3 + $0x7d0] sm:$0xff] }
  0xa9   :  { %v244_v12 = vadd.f32 %v243_v11, %v224_v8  ;;  %v504_v8 = vld [vmem:[%s2534_s3 + $0x570] sm:$0xff] }
  0xaa   :  { %757 = vmatpush.msra.mxu0 %v388_v10  ;;  %v576_v10 = vld [vmem:[%s2534_s3 + $0x7b0] sm:$0xff] }
  0xab   :  { %v1917_v15 = vmax.f32 %v244_v12, 0.0  ;;  %v500_v11 = vld [vmem:[%s2534_s3 + $0x550] sm:$0xff]  ;;  %v373_v12 = vld [vmem:[%s2534_s3 + $0x158] sm:$0xff] }
  0xac   :  { %758 = vmatpush.msra.mxu0 %v384_v13  ;;  %v449_v13 = vld [vmem:[%s2534_s3 + $0x3b8] sm:$0xff] }
  0xad   :  { %632 = vmatmul.f32.vlgmr.msra.gmra.mxu1 %v1917_v15 }
  0xae   :  { %759 = vmatpush.msra.mxu0 %v380_v16  ;;  %776 = vmatpush.msra.mxu1 %v456_v17  ;;  %v496_v16 = vld [vmem:[%s2534_s3 + $0x530] sm:$0xff]  ;;  %v369_v17 = vld [vmem:[%s2534_s3 + $0x138] sm:$0xff] }
  0xaf   :  { %692 = vmatmul.f32.vlgmr.msrb.gmra.mxu0 %v1896_v6 }
  0xb0   :  { %760 = vmatpush.msra.mxu0 %v376_v19  ;;  %777 = vmatpush.msra.mxu1 %v452_v20  ;;  %v492_v19 = vld [vmem:[%s2534_s3 + $0x510] sm:$0xff] }
  0xb1   :  { %v568_v20 = vld [vmem:[%s2534_s3 + $0x770] sm:$0xff] }
  0xb2   :  { %761 = vmatpush.msra.mxu0 %v372_v22  ;;  %778 = vmatpush.msra.mxu1 %v448_v23  ;;  %v441_v22 = vld [vmem:[%s2534_s3 + $0x378] sm:$0xff]  ;;  %v488_v23 = vld [vmem:[%s2534_s3 + $0x4f0] sm:$0xff] }
  0xb4   :  { %762 = vmatpush.msra.mxu0 %v368_v24  ;;  %779 = vmatpush.msra.mxu1 %v444_v25  ;;  %v564_v24 = vld [vmem:[%s2534_s3 + $0x750] sm:$0xff]  ;;  %v361_v25 = vld [vmem:[%s2534_s3 + $0xf8] sm:$0xff] }
  0xb5   :  { %712 = vmatmul.f32.vlgmr.msrb.gmra.mxu1 %v1917_v15 }
  0xb6   :  { %763 = vmatpush.msra.mxu0 %v364_v26  ;;  %780 = vmatpush.msra.mxu1 %v440_v27  ;;  %v437_v26 = vld [vmem:[%s2534_s3 + $0x358] sm:$0xff]  ;;  %v484_v27 = vld [vmem:[%s2534_s3 + $0x4d0] sm:$0xff] }
  0xb8   :  { %764 = vmatpush.msra.mxu0 %v360_v28  ;;  %781 = vmatpush.msra.mxu1 %v436_v29  ;;  %v560_v28 = vld [vmem:[%s2534_s3 + $0x730] sm:$0xff]  ;;  %v357_v29 = vld [vmem:[%s2534_s3 + $0xd8] sm:$0xff] }
  0xba   :  { %765 = vmatpush.msra.mxu0 %v356_v30  ;;  %782 = vmatpush.msra.mxu1 %v432_v31  ;;  %v433_v30 = vld [vmem:[%s2534_s3 + $0x338] sm:$0xff]  ;;  %v480_v31 = vld [vmem:[%s2534_s3 + $0x4b0] sm:$0xff] }
  0xbc   :  { %766 = vmatpush.msra.mxu0 %v352_v32  ;;  %783 = vmatpush.msra.mxu1 %v428_v33  ;;  %v556_v32 = vld [vmem:[%s2534_s3 + $0x710] sm:$0xff]  ;;  %v353_v33 = vld [vmem:[%s2534_s3 + $0xb8] sm:$0xff] }
  0xbe   :  { %767 = vmatpush.msra.mxu0 %v348_v34  ;;  %784 = vmatpush.msra.mxu1 %v424_v35  ;;  %v429_v34 = vld [vmem:[%s2534_s3 + $0x318] sm:$0xff]  ;;  %v476_v35 = vld [vmem:[%s2534_s3 + $0x490] sm:$0xff] }
  0xc0   :  { %768 = vmatpush.msra.mxu0 %v344_v36  ;;  %785 = vmatpush.msra.mxu1 %v420_v37  ;;  %v552_v36 = vld [vmem:[%s2534_s3 + $0x6f0] sm:$0xff]  ;;  %v349_v37 = vld [vmem:[%s2534_s3 + $0x98] sm:$0xff] }
  0xc1   :  { %v263_v41 = vpop.f32.mrf.mxu0 }
  0xc2   :  { %v264_v44 = vadd.f32 %v263_v41, %v160_v38  ;;  %769 = vmatpush.msra.mxu0 %v340_v39  ;;  %786 = vmatpush.msra.mxu1 %v416_v40  ;;  %v425_v38 = vld [vmem:[%s2534_s3 + $0x2f8] sm:$0xff]  ;;  %v472_v39 = vld [vmem:[%s2534_s3 + $0x470] sm:$0xff] }
  0xc3   :  { %v283_v45 = vpop.f32.mrf.mxu1  ;;  %v548_v40 = vld [vmem:[%s2534_s3 + $0x6d0] sm:$0xff]  ;;  %v345_v41 = vld [vmem:[%s2534_s3 + $0x78] sm:$0xff] }
  0xc4   :  { %v284_v48 = vadd.f32 %v283_v45, %v264_v44  ;;  %770 = vmatpush.msra.mxu0 %v336_v42  ;;  %787 = vmatpush.msra.mxu1 %v412_v43  ;;  %v421_v42 = vld [vmem:[%s2534_s3 + $0x2d8] sm:$0xff]  ;;  %v468_v43 = vld [vmem:[%s2534_s3 + $0x450] sm:$0xff] }
  0xc5   :  { %v544_v44 = vld [vmem:[%s2534_s3 + $0x6b0] sm:$0xff]  ;;  %v341_v45 = vld [vmem:[%s2534_s3 + $0x58] sm:$0xff] }
  0xc6   :  { %v2011_v52 = vmax.f32 %v284_v48, 0.0  ;;  %771 = vmatpush.msra.mxu0 %v332_v46  ;;  %788 = vmatpush.msra.mxu1 %v408_v47  ;;  %v417_v46 = vld [vmem:[%s2534_s3 + $0x2b8] sm:$0xff]  ;;  %v464_v47 = vld [vmem:[%s2534_s3 + $0x430] sm:$0xff] }
  0xc7   :  { %v303_v55 = vpop.f32.mrf.mxu2  ;;  %772 = vmatmul.f32.vlgmr.msra.gmra.mxu0 %v1896_v6  ;;  %v540_v48 = vld [vmem:[%s2534_s3 + $0x690] sm:$0xff] }
  0xc8   :  { %v304_v56 = vadd.f32 %v303_v55, %v161_v49  ;;  %652 = vmatmul.f32.vlgmr.msra.gmra.mxu2 %v2011_v52  ;;  %836 = vmatpush.msrb.mxu0 %v393_v51  ;;  %v337_v49 = vld [vmem:[%s2534_s3 + $0x38] sm:$0xff] }
  0xc9   :  { %796 = vmatpush.msra.mxu2 %v520_v53  ;;  %v323_v59 = vpop.f32.mrf.mxu3  ;;  %789 = vmatpush.msra.mxu1 %v404_v54  ;;  %v413_v51 = vld [vmem:[%s2534_s3 + $0x298] sm:$0xff]  ;;  %v460_v53 = vld [vmem:[%s2534_s3 + $0x410] sm:$0xff] }
  0xca   :  { %v324_v61 = vadd.f32 %v323_v59, %v304_v56  ;;  %837 = vmatpush.msrb.mxu0 %v389_v50  ;;  %v536_v54 = vld [vmem:[%s2534_s3 + $0x670] sm:$0xff]  ;;  %v333_v55 = vld [vmem:[%s2534_s3 + $0x18] sm:$0xff] }
  0xcb   :  { %797 = vmatpush.msra.mxu2 %v516_v57  ;;  %790 = vmatpush.msra.mxu1 %v400_v58  ;;  %v409_v50 = vld [vmem:[%s2534_s3 + $0x278] sm:$0xff]  ;;  %v532_v57 = vld [vmem:[%s2534_s3 + $0x650] sm:$0xff] }
  0xcc   :  { %v2039_v1 = vmax.f32 %v324_v61, 0.0  ;;  %838 = vmatpush.msrb.mxu0 %v385_v60  ;;  %v521_v56 = vld [vmem:[%s2534_s3 + $0x5f8] sm:$0xff]  ;;  %v528_v60 = vld [vmem:[%s2534_s3 + $0x630] sm:$0xff] }
  0xcd   :  { %798 = vmatpush.msra.mxu2 %v512_v63  ;;  %791 = vmatpush.msra.mxu1 %v396_v0  ;;  %v405_v58 = vld [vmem:[%s2534_s3 + $0x258] sm:$0xff]  ;;  %v524_v0 = vld [vmem:[%s2534_s3 + $0x610] sm:$0xff] }
  0xce   :  { %672 = vmatmul.f32.vlgmr.msra.gmra.mxu3 %v2039_v1  ;;  %792 = vmatmul.f32.vlgmr.msra.gmra.mxu1 %v1917_v15  ;;  %v517_v59 = vld [vmem:[%s2534_s3 + $0x5d8] sm:$0xff] }
  0xcf   :  { %799 = vmatpush.msra.mxu2 %v508_v2  ;;  %816 = vmatpush.msra.mxu3 %v584_v4  ;;  %v401_v61 = vld [vmem:[%s2534_s3 + $0x238] sm:$0xff] }
  0xd0   :  { %839 = vmatpush.msrb.mxu0 %v381_v5  ;;  %856 = vmatpush.msrb.mxu1 %v457_v62  ;;  %v513_v63 = vld [vmem:[%s2534_s3 + $0x5b8] sm:$0xff] }
  0xd1   :  { %732 = vmatmul.f32.vlgmr.msrb.gmra.mxu2 %v2011_v52  ;;  %817 = vmatpush.msra.mxu3 %v580_v7  ;;  %v397_v2 = vld [vmem:[%s2534_s3 + $0x218] sm:$0xff] }
  0xd2   :  { %800 = vmatpush.msra.mxu2 %v504_v8  ;;  %840 = vmatpush.msrb.mxu0 %v377_v9  ;;  %v509_v4 = vld [vmem:[%s2534_s3 + $0x598] sm:$0xff] }
  0xd3   :  { %857 = vmatpush.msrb.mxu1 %v453_v3  ;;  %818 = vmatpush.msra.mxu3 %v576_v10  ;;  %v585_v5 = vld [vmem:[%s2534_s3 + $0x7f8] sm:$0xff] }
  0xd4   :  { %801 = vmatpush.msra.mxu2 %v500_v11  ;;  %841 = vmatpush.msrb.mxu0 %v373_v12  ;;  %v505_v62 = vld [vmem:[%s2534_s3 + $0x578] sm:$0xff] }
  0xd5   :  { %858 = vmatpush.msrb.mxu1 %v449_v13  ;;  %819 = vmatpush.msra.mxu3 %v572_v14  ;;  %v581_v7 = vld [vmem:[%s2534_s3 + $0x7d8] sm:$0xff] }
  0xd6   :  { %802 = vmatpush.msra.mxu2 %v496_v16  ;;  %842 = vmatpush.msrb.mxu0 %v369_v17  ;;  %v501_v8 = vld [vmem:[%s2534_s3 + $0x558] sm:$0xff] }
  0xd7   :  { %859 = vmatpush.msrb.mxu1 %v445_v18  ;;  %752 = vmatmul.f32.vlgmr.msrb.gmra.mxu3 %v2039_v1  ;;  %v577_v9 = vld [vmem:[%s2534_s3 + $0x7b8] sm:$0xff] }
  0xd8   :  { %803 = vmatpush.msra.mxu2 %v492_v19  ;;  %820 = vmatpush.msra.mxu3 %v568_v20  ;;  %v497_v3 = vld [vmem:[%s2534_s3 + $0x538] sm:$0xff] }
  0xd9   :  { %843 = vmatpush.msrb.mxu0 %v365_v21  ;;  %860 = vmatpush.msrb.mxu1 %v441_v22  ;;  %v573_v10 = vld [vmem:[%s2534_s3 + $0x798] sm:$0xff] }
  0xda   :  { %804 = vmatpush.msra.mxu2 %v488_v23  ;;  %821 = vmatpush.msra.mxu3 %v564_v24  ;;  %v493_v11 = vld [vmem:[%s2534_s3 + $0x518] sm:$0xff] }
  0xdb   :  { %844 = vmatpush.msrb.mxu0 %v361_v25  ;;  %861 = vmatpush.msrb.mxu1 %v437_v26  ;;  %v569_v12 = vld [vmem:[%s2534_s3 + $0x778] sm:$0xff] }
  0xdc   :  { %805 = vmatpush.msra.mxu2 %v484_v27  ;;  %822 = vmatpush.msra.mxu3 %v560_v28  ;;  %v489_v13 = vld [vmem:[%s2534_s3 + $0x4f8] sm:$0xff] }
  0xdd   :  { %845 = vmatpush.msrb.mxu0 %v357_v29  ;;  %862 = vmatpush.msrb.mxu1 %v433_v30  ;;  %v565_v14 = vld [vmem:[%s2534_s3 + $0x758] sm:$0xff] }
  0xde   :  { %806 = vmatpush.msra.mxu2 %v480_v31  ;;  %823 = vmatpush.msra.mxu3 %v556_v32  ;;  %v485_v16 = vld [vmem:[%s2534_s3 + $0x4d8] sm:$0xff] }
  0xdf   :  { %846 = vmatpush.msrb.mxu0 %v353_v33  ;;  %863 = vmatpush.msrb.mxu1 %v429_v34  ;;  %v561_v17 = vld [vmem:[%s2534_s3 + $0x738] sm:$0xff]  ;;  %v938_v33 = vld [vmem:[%s2536_s5 + $0x70] sm:$0xff] }
  0xe0   :  { %807 = vmatpush.msra.mxu2 %v476_v35  ;;  %824 = vmatpush.msra.mxu3 %v552_v36  ;;  %v481_v18 = vld [vmem:[%s2534_s3 + $0x4b8] sm:$0xff]  ;;  %v937_v35 = vld [vmem:[%s2536_s5 + $0x68] sm:$0xff]  ;;  %v936_v36 = vld [vmem:[%s2536_s5 + $0x60] sm:$0xff] }
  0xe1   :  { %847 = vmatpush.msrb.mxu0 %v349_v37  ;;  %864 = vmatpush.msrb.mxu1 %v425_v38  ;;  %v557_v19 = vld [vmem:[%s2534_s3 + $0x718] sm:$0xff] }
  0xe2   :  { %808 = vmatpush.msra.mxu2 %v472_v39  ;;  %825 = vmatpush.msra.mxu3 %v548_v40  ;;  %v477_v20 = vld [vmem:[%s2534_s3 + $0x498] sm:$0xff]  ;;  %v934_v39 = vld [vmem:[%s2536_s5 + $0x50] sm:$0xff] }
  0xe3   :  { %848 = vmatpush.msrb.mxu0 %v345_v41  ;;  %865 = vmatpush.msrb.mxu1 %v421_v42  ;;  %v553_v21 = vld [vmem:[%s2534_s3 + $0x6f8] sm:$0xff]  ;;  %v954_v40 = vld [vmem:[%s2536_s5 + $0xf0] sm:$0xff]  ;;  %v933_v41 = vld [vmem:[%s2536_s5 + $0x48] sm:$0xff] }
  0xe4   :  { %809 = vmatpush.msra.mxu2 %v468_v43  ;;  %826 = vmatpush.msra.mxu3 %v544_v44  ;;  %v473_v22 = vld [vmem:[%s2534_s3 + $0x478] sm:$0xff]  ;;  %v953_v42 = vld [vmem:[%s2536_s5 + $0xe8] sm:$0xff]  ;;  %v932_v43 = vld [vmem:[%s2536_s5 + $0x40] sm:$0xff] }
  0xe5   :  { %849 = vmatpush.msrb.mxu0 %v341_v45  ;;  %866 = vmatpush.msrb.mxu1 %v417_v46  ;;  %v549_v23 = vld [vmem:[%s2534_s3 + $0x6d8] sm:$0xff]  ;;  %v952_v44 = vld [vmem:[%s2536_s5 + $0xe0] sm:$0xff] }
  0xe6   :  { %810 = vmatpush.msra.mxu2 %v464_v47  ;;  %827 = vmatpush.msra.mxu3 %v540_v48  ;;  %v469_v24 = vld [vmem:[%s2534_s3 + $0x458] sm:$0xff]  ;;  %v930_v47 = vld [vmem:[%s2536_s5 + $0x30] sm:$0xff] }
  0xe7   :  { %850 = vmatpush.msrb.mxu0 %v337_v49  ;;  %867 = vmatpush.msrb.mxu1 %v413_v51  ;;  %v545_v25 = vld [vmem:[%s2534_s3 + $0x6b8] sm:$0xff]  ;;  %v950_v48 = vld [vmem:[%s2536_s5 + $0xd0] sm:$0xff]  ;;  %v929_v49 = vld [vmem:[%s2536_s5 + $0x28] sm:$0xff] }
  0xe8   :  { %811 = vmatpush.msra.mxu2 %v460_v53  ;;  %828 = vmatpush.msra.mxu3 %v536_v54  ;;  %v465_v26 = vld [vmem:[%s2534_s3 + $0x438] sm:$0xff]  ;;  %v949_v51 = vld [vmem:[%s2536_s5 + $0xc8] sm:$0xff]  ;;  %v928_v53 = vld [vmem:[%s2536_s5 + $0x20] sm:$0xff] }
  0xe9   :  { %851 = vmatpush.msrb.mxu0 %v333_v55  ;;  %868 = vmatpush.msrb.mxu1 %v409_v50  ;;  %v541_v27 = vld [vmem:[%s2534_s3 + $0x698] sm:$0xff]  ;;  %v948_v54 = vld [vmem:[%s2536_s5 + $0xc0] sm:$0xff] }
  0xea   :  { %812 = vmatmul.f32.vlgmr.msra.gmra.mxu2 %v2011_v52  ;;  %852 = vmatmul.f32.vlgmr.msrb.gmra.mxu0 %v1896_v6  ;;  %v939_v28 = vld [vmem:[%s2536_s5 + $0x78] sm:$0xff] }
  0xeb   :  { %876 = vmatpush.msrb.mxu2 %v521_v56  ;;  %829 = vmatpush.msra.mxu3 %v532_v57  ;;  %v461_v29 = vld [vmem:[%s2534_s3 + $0x418] sm:$0xff]  ;;  %v926_v56 = vld [vmem:[%s2536_s5 + $0x10] sm:$0xff] }
  0xec   :  { %869 = vmatpush.msrb.mxu1 %v405_v58  ;;  %992 = vmatpush.msra.mxu0 %v939_v28  ;;  %v537_v30 = vld [vmem:[%s2534_s3 + $0x678] sm:$0xff]  ;;  %v946_v57 = vld [vmem:[%s2536_s5 + $0xb0] sm:$0xff]  ;;  %v925_v58 = vld [vmem:[%s2536_s5 + $0x8] sm:$0xff] }
  0xed   :  { %877 = vmatpush.msrb.mxu2 %v517_v59  ;;  %830 = vmatpush.msra.mxu3 %v528_v60  ;;  %v533_v31 = vld [vmem:[%s2534_s3 + $0x658] sm:$0xff]  ;;  %v945_v59 = vld [vmem:[%s2536_s5 + $0xa8] sm:$0xff] }
  0xee   :  { %870 = vmatpush.msrb.mxu1 %v401_v61  ;;  %v529_v32 = vld [vmem:[%s2534_s3 + $0x638] sm:$0xff]  ;;  %993 = vmatpush.msra.mxu0 %v938_v33  ;;  %v924_v61 = vld [vmem:[%s2536_s5] sm:$0xff] }
  0xef   :  { %878 = vmatpush.msrb.mxu2 %v513_v63  ;;  %831 = vmatpush.msra.mxu3 %v524_v0  ;;  %v525_v34 = vld [vmem:[%s2534_s3 + $0x618] sm:$0xff]  ;;  %v944_v63 = vld [vmem:[%s2536_s5 + $0xa0] sm:$0xff] }
  0xf0   :  { %871 = vmatpush.msrb.mxu1 %v397_v2  ;;  %832 = vmatmul.f32.vlgmr.msra.gmra.mxu3 %v2039_v1  ;;  %v955_v37 = vld [vmem:[%s2536_s5 + $0xf8] sm:$0xff]  ;;  %v970_v2 = vld [vmem:[%s2536_s5 + $0x170] sm:$0xff] }
  0xf1   :  { %872 = vmatmul.f32.vlgmr.msrb.gmra.mxu1 %v1917_v15  ;;  %879 = vmatpush.msrb.mxu2 %v509_v4  ;;  %v935_v38 = vld [vmem:[%s2536_s5 + $0x58] sm:$0xff]  ;;  %v942_v4 = vld [vmem:[%s2536_s5 + $0x90] sm:$0xff] }
  0xf2   :  { %896 = vmatpush.msrb.mxu3 %v585_v5  ;;  %994 = vmatpush.msra.mxu0 %v937_v35  ;;  %v931_v45 = vld [vmem:[%s2536_s5 + $0x38] sm:$0xff]  ;;  %v969_v5 = vld [vmem:[%s2536_s5 + $0x168] sm:$0xff]  ;;  %v958_v35 = vld [vmem:[%s2536_s5 + $0x110] sm:$0xff] }
  0xf3   :  { %880 = vmatpush.msrb.mxu2 %v505_v62  ;;  %1012 = vmatpush.msra.mxu1 %v955_v37  ;;  %v951_v46 = vld [vmem:[%s2536_s5 + $0xd8] sm:$0xff]  ;;  %v941_v62 = vld [vmem:[%s2536_s5 + $0x88] sm:$0xff] }
  0xf4   :  { %897 = vmatpush.msrb.mxu3 %v581_v7  ;;  %995 = vmatpush.msra.mxu0 %v936_v36  ;;  %v927_v55 = vld [vmem:[%s2536_s5 + $0x18] sm:$0xff]  ;;  %v968_v7 = vld [vmem:[%s2536_s5 + $0x160] sm:$0xff]  ;;  %v957_v37 = vld [vmem:[%s2536_s5 + $0x108] sm:$0xff] }
  0xf5   :  { %881 = vmatpush.msrb.mxu2 %v501_v8  ;;  %1013 = vmatpush.msra.mxu1 %v954_v40  ;;  %v947_v50 = vld [vmem:[%s2536_s5 + $0xb8] sm:$0xff]  ;;  %v940_v8 = vld [vmem:[%s2536_s5 + $0x80] sm:$0xff] }
  0xf6   :  { %898 = vmatpush.msrb.mxu3 %v577_v9  ;;  %996 = vmatpush.msra.mxu0 %v935_v38  ;;  %v971_v60 = vld [vmem:[%s2536_s5 + $0x178] sm:$0xff]  ;;  %v956_v38 = vld [vmem:[%s2536_s5 + $0x100] sm:$0xff] }
  0xf7   :  { %882 = vmatpush.msrb.mxu2 %v497_v3  ;;  %1014 = vmatpush.msra.mxu1 %v953_v42  ;;  %v943_v0 = vld [vmem:[%s2536_s5 + $0x98] sm:$0xff]  ;;  %v2435_v3 = vld [vmem:[%s2538_s4] sm:$0xf] }
  0xf8   :  { %899 = vmatpush.msrb.mxu3 %v573_v10  ;;  %997 = vmatpush.msra.mxu0 %v934_v39  ;;  %v967_v9 = vld [vmem:[%s2536_s5 + $0x158] sm:$0xff]  ;;  %v966_v10 = vld [vmem:[%s2536_s5 + $0x150] sm:$0xff] }
  0xf9   :  { %883 = vmatpush.msrb.mxu2 %v493_v11  ;;  %1015 = vmatpush.msra.mxu1 %v952_v44  ;;  %v588_v11 = vperm.slane %v2435_v3, 0 }
  0xfa   :  { %900 = vmatpush.msrb.mxu3 %v569_v12  ;;  %998 = vmatpush.msra.mxu0 %v933_v41  ;;  %v986_v41 = vld [vmem:[%s2536_s5 + $0x1f0] sm:$0xff] }
  0xfb   :  { %884 = vmatpush.msrb.mxu2 %v489_v13  ;;  %1016 = vmatpush.msra.mxu1 %v951_v46  ;;  %v965_v13 = vld [vmem:[%s2536_s5 + $0x148] sm:$0xff] }
  0xfc   :  { %901 = vmatpush.msrb.mxu3 %v565_v14  ;;  %999 = vmatpush.msra.mxu0 %v932_v43  ;;  %v964_v14 = vld [vmem:[%s2536_s5 + $0x140] sm:$0xff]  ;;  %v985_v43 = vld [vmem:[%s2536_s5 + $0x1e8] sm:$0xff] }
  0xfd   :  { %885 = vmatpush.msrb.mxu2 %v485_v16  ;;  %1017 = vmatpush.msra.mxu1 %v950_v48  ;;  %v982_v48 = vld [vmem:[%s2536_s5 + $0x1d0] sm:$0xff] }
  0xfe   :  { %902 = vmatpush.msrb.mxu3 %v561_v17  ;;  %1000 = vmatpush.msra.mxu0 %v931_v45  ;;  %v984_v45 = vld [vmem:[%s2536_s5 + $0x1e0] sm:$0xff] }
  0xff   :  { %886 = vmatpush.msrb.mxu2 %v481_v18  ;;  %1018 = vmatpush.msra.mxu1 %v949_v51  ;;  %v963_v18 = vld [vmem:[%s2536_s5 + $0x138] sm:$0xff] }
 0x100   :  { %903 = vmatpush.msrb.mxu3 %v557_v19  ;;  %1001 = vmatpush.msra.mxu0 %v930_v47  ;;  %v983_v47 = vld [vmem:[%s2536_s5 + $0x1d8] sm:$0xff] }
 0x101   :  { %887 = vmatpush.msrb.mxu2 %v477_v20  ;;  %1019 = vmatpush.msra.mxu1 %v948_v54  ;;  %v979_v51 = vld [vmem:[%s2536_s5 + $0x1b8] sm:$0xff] }
 0x102   :  { %904 = vmatpush.msrb.mxu3 %v553_v21  ;;  %1002 = vmatpush.msra.mxu0 %v929_v49  ;;  %v962_v21 = vld [vmem:[%s2536_s5 + $0x130] sm:$0xff]  ;;  %v981_v49 = vld [vmem:[%s2536_s5 + $0x1c8] sm:$0xff] }
 0x103   :  { %888 = vmatpush.msrb.mxu2 %v473_v22  ;;  %1020 = vmatpush.msra.mxu1 %v947_v50  ;;  %v589_v22 = vperm.slane %v2435_v3, 1  ;;  %v978_v50 = vld [vmem:[%s2536_s5 + $0x1b0] sm:$0xff] }
 0x104   :  { %905 = vmatpush.msrb.mxu3 %v549_v23  ;;  %1003 = vmatpush.msra.mxu0 %v928_v53  ;;  %v961_v23 = vld [vmem:[%s2536_s5 + $0x128] sm:$0xff]  ;;  %v590_v53 = vperm.slane %v2435_v3, 2 }
 0x105   :  { %889 = vmatpush.msrb.mxu2 %v469_v24  ;;  %1021 = vmatpush.msra.mxu1 %v946_v57  ;;  %v977_v57 = vld [vmem:[%s2536_s5 + $0x1a8] sm:$0xff] }
 0x106   :  { %906 = vmatpush.msrb.mxu3 %v545_v25  ;;  %1004 = vmatpush.msra.mxu0 %v927_v55  ;;  %v960_v25 = vld [vmem:[%s2536_s5 + $0x120] sm:$0xff] }
 0x107   :  { %890 = vmatpush.msrb.mxu2 %v465_v26  ;;  %1022 = vmatpush.msra.mxu1 %v945_v59  ;;  %v976_v59 = vld [vmem:[%s2536_s5 + $0x1a0] sm:$0xff] }
 0x108   :  { %907 = vmatpush.msrb.mxu3 %v541_v27  ;;  %1005 = vmatpush.msra.mxu0 %v926_v56 }
 0x109   :  { %891 = vmatpush.msrb.mxu2 %v461_v29  ;;  %1023 = vmatpush.msra.mxu1 %v944_v63 }
 0x10a   :  { %908 = vmatpush.msrb.mxu3 %v537_v30  ;;  %892 = vmatmul.f32.vlgmr.msrb.gmra.mxu2 %v2011_v52 }
 0x10b   :  { %1032 = vmatpush.msra.mxu2 %v971_v60  ;;  %1006 = vmatpush.msra.mxu0 %v925_v58 }
 0x10c   :  { %909 = vmatpush.msrb.mxu3 %v533_v31  ;;  %1024 = vmatpush.msra.mxu1 %v943_v0  ;;  %v975_v0 = vld [vmem:[%s2536_s5 + $0x198] sm:$0xff] }
 0x10d   :  { %1007 = vmatpush.msra.mxu0 %v924_v61  ;;  %1033 = vmatpush.msra.mxu2 %v970_v2 }
 0x10e   :  { %910 = vmatpush.msrb.mxu3 %v529_v32  ;;  %1025 = vmatpush.msra.mxu1 %v942_v4  ;;  %v959_v32 = vld [vmem:[%s2536_s5 + $0x118] sm:$0xff]  ;;  %v974_v4 = vld [vmem:[%s2536_s5 + $0x190] sm:$0xff] }
 0x10f   :  { %1034 = vmatpush.msra.mxu2 %v969_v5 }
 0x110   :  { %911 = vmatpush.msrb.mxu3 %v525_v34  ;;  %1026 = vmatpush.msra.mxu1 %v941_v62  ;;  %v973_v62 = vld [vmem:[%s2536_s5 + $0x188] sm:$0xff] }
 0x111   :  { %912 = vmatmul.f32.vlgmr.msrb.gmra.mxu3 %v2039_v1  ;;  %1035 = vmatpush.msra.mxu2 %v968_v7 }
 0x112   :  { %1027 = vmatpush.msra.mxu1 %v940_v8  ;;  %v972_v8 = vld [vmem:[%s2536_s5 + $0x180] sm:$0xff] }
 0x113   :  { %1036 = vmatpush.msra.mxu2 %v967_v9  ;;  %v591_v9 = vperm.slane %v2435_v3, 3 }
 0x115   :  { %1037 = vmatpush.msra.mxu2 %v966_v10 }
 0x117   :  { %1038 = vmatpush.msra.mxu2 %v965_v13 }
 0x119   :  { %1039 = vmatpush.msra.mxu2 %v964_v14 }
 0x11b   :  { %1040 = vmatpush.msra.mxu2 %v963_v18 }
 0x11d   :  { %1041 = vmatpush.msra.mxu2 %v962_v21 }
 0x11f   :  { %1042 = vmatpush.msra.mxu2 %v961_v23 }
 0x121   :  { %1043 = vmatpush.msra.mxu2 %v960_v25 }
 0x123   :  { %1044 = vmatpush.msra.mxu2 %v959_v32 }
 0x124   :  { %v613_v12 = vpop.f32.mrf.mxu0 }
 0x125   :  { %v614_v16 = vadd.f32 %v613_v12, %v588_v11  ;;  %1045 = vmatpush.msra.mxu2 %v958_v35 }
 0x127   :  { %1046 = vmatpush.msra.mxu2 %v957_v37 }
 0x129   :  { %1047 = vmatpush.msra.mxu2 %v956_v38 }
 0x12a   :  { %v633_v17 = vpop.f32.mrf.mxu1 }
 0x12b   :  { %v634_v20 = vadd.f32 %v633_v17, %v614_v16 }
 0x12c   :  { %v693_v27 = vpop.f32.mrf.mxu0 }
 0x12d   :  { %v694_v29 = vadd.f32 %v693_v27, %v589_v22 }
 0x132   :  { %v713_v30 = vpop.f32.mrf.mxu1 }
 0x133   :  { %v714_v36 = vadd.f32 %v713_v30, %v694_v29 }
 0x144   :  { %v773_v54 = vpop.f32.mrf.mxu0 }
 0x145   :  { %v774_v56 = vadd.f32 %v773_v54, %v590_v53 }
 0x14b   :  { %v653_v19 = vpop.f32.mrf.mxu2  ;;  %v793_v55 = vpop.f32.mrf.mxu1 }
 0x14c   :  { %v654_v24 = vadd.f32 %v653_v19, %v634_v20  ;;  %v794_v60 = vadd.f32 %v793_v55, %v774_v56  ;;  %v1077_v20 = vld [vmem:[%s2537_s6] ss:$0 sm:$0xff] }
 0x151   :  { %v673_v26 = vpop.f32.mrf.mxu3 }
 0x152   :  { %v674_v28 = vadd.f32 %v673_v26, %v654_v24 }
 0x154   :  { %v916_v31 = vmax.f32 %v674_v28, 0.0  ;;  %v733_v34 = vpop.f32.mrf.mxu2 }
 0x155   :  { %v734_v39 = vadd.f32 %v733_v34, %v714_v36 }
 0x156   :  { %v920_v33 = vadd.f32 %v916_v31, %v1896_v6  ;;  %v987_v6 = vld [vmem:[%s2536_s5 + $0x1f8] sm:$0xff] }
 0x157   :  { %1052 = vmatpush.msra.mxu3 %v987_v6 }
 0x158   :  { %1008 = vmatmul.f32.vlgmr.msra.gmra.mxu0 %v920_v33 }
 0x159   :  { %1053 = vmatpush.msra.mxu3 %v986_v41 }
 0x15a   :  { %v753_v40 = vpop.f32.mrf.mxu3 }
 0x15b   :  { %v754_v42 = vadd.f32 %v753_v40, %v734_v39  ;;  %1054 = vmatpush.msra.mxu3 %v985_v43 }
 0x15d   :  { %v917_v44 = vmax.f32 %v754_v42, 0.0  ;;  %1055 = vmatpush.msra.mxu3 %v984_v45 }
 0x15f   :  { %v921_v46 = vadd.f32 %v917_v44, %v1917_v15  ;;  %1056 = vmatpush.msra.mxu3 %v983_v47  ;;  %v980_v15 = vld [vmem:[%s2536_s5 + $0x1c0] sm:$0xff] }
 0x161   :  { %1028 = vmatmul.f32.vlgmr.msra.gmra.mxu1 %v921_v46  ;;  %1057 = vmatpush.msra.mxu3 %v982_v48 }
 0x163   :  { %1058 = vmatpush.msra.mxu3 %v981_v49 }
 0x165   :  { %1059 = vmatpush.msra.mxu3 %v980_v15 }
 0x167   :  { %1060 = vmatpush.msra.mxu3 %v979_v51  ;;  %v853_v10 = vpop.f32.mrf.mxu0 }
 0x168   :  { %v854_v12 = vadd.f32 %v853_v10, %v591_v9 }
 0x169   :  { %1061 = vmatpush.msra.mxu3 %v978_v50 }
 0x16b   :  { %1062 = vmatpush.msra.mxu3 %v977_v57 }
 0x16d   :  { %v813_v58 = vpop.f32.mrf.mxu2  ;;  %1063 = vmatpush.msra.mxu3 %v976_v59 }
 0x16e   :  { %v814_v61 = vadd.f32 %v813_v58, %v794_v60  ;;  %v873_v11 = vpop.f32.mrf.mxu1 }
 0x16f   :  { %1064 = vmatpush.msra.mxu3 %v975_v0  ;;  %v874_v14 = vadd.f32 %v873_v11, %v854_v12 }
 0x171   :  { %1065 = vmatpush.msra.mxu3 %v974_v4 }
 0x173   :  { %v833_v63 = vpop.f32.mrf.mxu3  ;;  %1066 = vmatpush.msra.mxu3 %v973_v62 }
 0x174   :  { %v834_v2 = vadd.f32 %v833_v63, %v814_v61 }
 0x175   :  { %1067 = vmatpush.msra.mxu3 %v972_v8 }
 0x176   :  { %v918_v5 = vmax.f32 %v834_v2, 0.0 }
 0x178   :  { %v922_v7 = vadd.f32 %v918_v5, %v2011_v52 }
 0x17a   :  { %1048 = vmatmul.f32.vlgmr.msra.gmra.mxu2 %v922_v7 }
 0x18d   :  { %v893_v13 = vpop.f32.mrf.mxu2 }
 0x18e   :  { %v894_v16 = vadd.f32 %v893_v13, %v874_v14 }
 0x194   :  { %v913_v17 = vpop.f32.mrf.mxu3 }
 0x195   :  { %v914_v18 = vadd.f32 %v913_v17, %v894_v16 }
 0x197   :  { %v919_v19 = vmax.f32 %v914_v18, 0.0 }
 0x199   :  { %v923_v52 = vadd.f32 %v919_v19, %v2039_v1 }
 0x19b   :  { %1068 = vmatmul.f32.vlgmr.msra.gmra.mxu3 %v923_v52 }
 0x1d5   :  { %v1009_v21 = vpop.f32.mrf.mxu0 }
 0x1d6   :  { %v1010_v23 = vadd.f32 %v1077_v20, %v1009_v21 }
 0x1de   :  { %v1029_v22 = vpop.f32.mrf.mxu1 }
 0x1df   :  { %v1030_v24 = vadd.f32 %v1029_v22, %v1010_v23 }
 0x1fd   :  { %v1049_v3 = vpop.f32.mrf.mxu2 }
 0x1fe   :  { %v1050_v25 = vadd.f32 %v1049_v3, %v1030_v24 }
 0x21e   :  { %v1069_v26 = vpop.f32.mrf.mxu3 }
 0x21f   :  { %v1070_v27 = vadd.f32 %v1069_v26, %v1050_v25 }
 0x221   :  { %1072 = vst [vmem:[%s2539_s7] sm:$0xff] %v1070_v27 }

</bundles_post_ra>
